<compile_context>
chip_gen: v6e
topology: v6e:2x2x1
jax: 0.10.0
libtpu: 0.0.40
codegen_flags: <defaults>
</compile_context>

<pallas_src>
import jax
import jax.numpy as jnp
from jax.experimental import pallas as pl
from jax.experimental.pallas import tpu as pltpu

CSI_INPUT_DIM = 50
HIDDEN_DIM = 25
EMBEDDING_DIM = 7
NEG_SLOPE = 0.01          # PyTorch nn.LeakyReLU default

HIDDEN_PAD = 128          # lane-aligned hidden / gate block width
OUT_PAD = 128             # lane-dense output slab width


def _leaky_relu(x):
    return jnp.where(x >= 0, x, NEG_SLOPE * x)


def encoder_es_kernel(x_ref, w_ih_t_ref, w_hh_t_ref, b_ih_ref, b_hh_ref,
                      w_l3_t_ref, b_l3_ref, out_ref):
    # x_ref:     (B, T, I)        batch-major input sequence
    # w_ih_t:    (I, 3*HP)        gate blocks [r|z|n] at lane offsets 0/HP/2HP
    # w_hh_t:    (HP, 3*HP)       rows >= H and per-gate cols >= H are zero
    # b_ih/b_hh: (1, 3*HP)
    # w_l3_t:    (HP, OUT_PAD)    rows >= H and cols >= E are zero
    # b_l3:      (1, OUT_PAD)
    # out_ref:   (B, OUT_PAD)     lane-dense; wrapper slices [:, :E]
    B, T, I = x_ref.shape
    HP = HIDDEN_PAD

    # ---- hoisted input projection: one batched MXU matmul for all timesteps ----
    x_flat = x_ref[...].reshape(B * T, I)                       # layout-preserving
    gi_all = jnp.dot(x_flat, w_ih_t_ref[...],
                     preferred_element_type=jnp.float32) + b_ih_ref[...]
    gi3 = gi_all.reshape(B, T, 3 * HP)                          # layout-preserving

    w_hh_t = w_hh_t_ref[...]
    b_hh_b = jnp.broadcast_to(b_hh_ref[...], (B, 3 * HP))       # hoisted broadcast

    # Padded hidden columns (>= HIDDEN_DIM) stay exactly zero through the
    # recurrence (gi = gh = 0 there => r = z = 0.5, n = 0, h' = 0.5 * 0 = 0).
    h = jnp.zeros((B, HP), dtype=jnp.float32)

    # ---- fully-unrolled GRU recurrence (only gh matmul on the serial chain) ----
    for t in range(T):
        gi_t = gi3[:, t, :]                                     # (B, 3*HP), static
        gh = jnp.dot(h, w_hh_t, preferred_element_type=jnp.float32) + b_hh_b
        r = jax.nn.sigmoid(gi_t[:, 0:HP] + gh[:, 0:HP])
        z = jax.nn.sigmoid(gi_t[:, HP:2 * HP] + gh[:, HP:2 * HP])
        n = jnp.tanh(gi_t[:, 2 * HP:3 * HP] + r * gh[:, 2 * HP:3 * HP])
        h = (1.0 - z) * n + z * h

    # ---- head: LeakyReLU -> Linear -> LeakyReLU, lane-dense store ----
    h = _leaky_relu(h)
    v = jnp.dot(h, w_l3_t_ref[...],
                preferred_element_type=jnp.float32) + b_l3_ref[...]
    out_ref[...] = _leaky_relu(v)


def _pad_gate_cols(w_t, h, hp):
    """(rows, 3h) -> (rows, 3hp) with each gate block placed at lane offset g*hp."""
    rows = w_t.shape[0]
    out = jnp.zeros((rows, 3 * hp), w_t.dtype)
    for g in range(3):
        out = out.at[:, g * hp: g * hp + h].set(w_t[:, g * h:(g + 1) * h])
    return out


def encoder_es(x, params):
    """x: (B, T, I) batch_first float32, like the PyTorch module."""
    B, T, I = x.shape
    assert I == CSI_INPUT_DIM
    x = x.astype(jnp.float32)

    H, HP, E = HIDDEN_DIM, HIDDEN_PAD, EMBEDDING_DIM

    # GRU weights, transposed and padded to lane-aligned gate blocks.
    w_ih_t = _pad_gate_cols(params["w_ih"].T, H, HP)            # (I, 3*HP)
    w_hh_t = jnp.zeros((HP, 3 * HP), jnp.float32).at[:H, :].set(
        _pad_gate_cols(params["w_hh"].T, H, HP))                # (HP, 3*HP)
    b_ih = _pad_gate_cols(params["b_ih"].reshape(1, 3 * H), H, HP)   # (1, 3*HP)
    b_hh = _pad_gate_cols(params["b_hh"].reshape(1, 3 * H), H, HP)   # (1, 3*HP)

    # Linear head, transposed and padded to a lane-dense output slab.
    w_l3_t = jnp.zeros((HP, OUT_PAD), jnp.float32).at[:H, :E].set(params["w_l3"].T)
    b_l3 = jnp.zeros((1, OUT_PAD), jnp.float32).at[:, :E].set(
        params["b_l3"].reshape(1, E))

    vmem = pl.BlockSpec(memory_space=pltpu.MemorySpace.VMEM)
    out = pl.pallas_call(
        encoder_es_kernel,
        out_shape=jax.ShapeDtypeStruct((B, OUT_PAD), jnp.float32),
        in_specs=[vmem] * 7,
        out_specs=vmem,
    )(x, w_ih_t, w_hh_t, b_ih, b_hh, w_l3_t, b_l3)

    v = out[:, :E]
    # PyTorch: v.squeeze() — removes size-1 dims (no-op for B=2, E=7)
    return jnp.squeeze(v)


def encoder_es_reference(x, params):
    """Pure-JAX reference matching PyTorch nn.GRU/nn.Linear semantics."""
    B, T, _ = x.shape
    H = HIDDEN_DIM
    h = jnp.zeros((B, H), jnp.float32)
    for t in range(T):
        gi = x[:, t, :] @ params["w_ih"].T + params["b_ih"]
        gh = h @ params["w_hh"].T + params["b_hh"]
        r = jax.nn.sigmoid(gi[:, :H] + gh[:, :H])
        z = jax.nn.sigmoid(gi[:, H:2 * H] + gh[:, H:2 * H])
        n = jnp.tanh(gi[:, 2 * H:] + r * gh[:, 2 * H:])
        h = (1.0 - z) * n + z * h
    h = _leaky_relu(h)
    v = h @ params["w_l3"].T + params["b_l3"]
    return jnp.squeeze(_leaky_relu(v))


def init_params(key):
    """Deterministic synthetic parameters matching nn.GRU / nn.Linear shapes."""
    ks = jax.random.split(key, 6)
    scale = 0.1
    return {
        # nn.GRU(50, 25): weight_ih_l0 (3H, I), weight_hh_l0 (3H, H), biases (3H,)
        "w_ih": scale * jax.random.normal(ks[0], (3 * HIDDEN_DIM, CSI_INPUT_DIM), jnp.float32),
        "w_hh": scale * jax.random.normal(ks[1], (3 * HIDDEN_DIM, HIDDEN_DIM), jnp.float32),
        "b_ih": scale * jax.random.normal(ks[2], (3 * HIDDEN_DIM,), jnp.float32),
        "b_hh": scale * jax.random.normal(ks[3], (3 * HIDDEN_DIM,), jnp.float32),
        # nn.Linear(25, 7): weight (E, H), bias (E,)
        "w_l3": scale * jax.random.normal(ks[4], (EMBEDDING_DIM, HIDDEN_DIM), jnp.float32),
        "b_l3": scale * jax.random.normal(ks[5], (EMBEDDING_DIM,), jnp.float32),
    }


if __name__ == "__main__":
    key = jax.random.PRNGKey(0)
    k_x, k_p = jax.random.split(key)

    B, T = 2, 8
    x = jax.random.normal(k_x, (B, T, CSI_INPUT_DIM), jnp.float32)
    params = init_params(k_p)

    v = encoder_es(x, params)
    v = jax.block_until_ready(v)
    assert v.shape == (B, EMBEDDING_DIM)

    v_ref = encoder_es_reference(x, params)
    assert jnp.allclose(v, v_ref, rtol=1e-4, atol=1e-4), "mismatch vs reference"

    print("KERNEL_OK")
</pallas_src>

<mosaic_0001>
module attributes {stable_mosaic.version = 11 : i64} {
  func.func @encoder_es_kernel(%arg0: memref<2x8x50xf32, #tpu.memory_space<vmem>>, %arg1: memref<50x384xf32, #tpu.memory_space<vmem>>, %arg2: memref<128x384xf32, #tpu.memory_space<vmem>>, %arg3: memref<1x384xf32, #tpu.memory_space<vmem>>, %arg4: memref<1x384xf32, #tpu.memory_space<vmem>>, %arg5: memref<128x128xf32, #tpu.memory_space<vmem>>, %arg6: memref<1x128xf32, #tpu.memory_space<vmem>>, %arg7: memref<2x128xf32, #tpu.memory_space<vmem>>) attributes {dimension_semantics = [], scalar_prefetch = 0 : i64, scratch_operands = 0 : i64, tpu.core_type = #tpu.core_type<tc>} {
    %c0 = arith.constant 0 : index
    %c0_0 = arith.constant 0 : index
    %c0_1 = arith.constant 0 : index
    %0 = vector.load %arg0[%c0, %c0_0, %c0_1] : memref<2x8x50xf32, #tpu.memory_space<vmem>>, vector<2x8x50xf32>
    %1 = vector.shape_cast %0 : vector<2x8x50xf32> to vector<16x50xf32>
    %c0_2 = arith.constant 0 : index
    %c0_3 = arith.constant 0 : index
    %2 = vector.load %arg1[%c0_2, %c0_3] : memref<50x384xf32, #tpu.memory_space<vmem>>, vector<50x384xf32>
    %cst = arith.constant dense<0.000000e+00> : vector<16x384xf32>
    %3 = tpu.matmul %1, %2, %cst {dimension_numbers = #tpu.dot_dimension_numbers<[1], [0], [0], [1], [0, 0, 1, 1], [], []>} : vector<16x50xf32>, vector<50x384xf32>, vector<16x384xf32> -> vector<16x384xf32>
    %c0_4 = arith.constant 0 : index
    %c0_5 = arith.constant 0 : index
    %4 = vector.load %arg3[%c0_4, %c0_5] : memref<1x384xf32, #tpu.memory_space<vmem>>, vector<1x384xf32>
    %5 = vector.broadcast %4 : vector<1x384xf32> to vector<16x384xf32>
    %6 = arith.addf %3, %5 : vector<16x384xf32>
    %7 = vector.shape_cast %6 : vector<16x384xf32> to vector<2x8x384xf32>
    %c0_6 = arith.constant 0 : index
    %c0_7 = arith.constant 0 : index
    %8 = vector.load %arg2[%c0_6, %c0_7] : memref<128x384xf32, #tpu.memory_space<vmem>>, vector<128x384xf32>
    %c0_8 = arith.constant 0 : index
    %c0_9 = arith.constant 0 : index
    %9 = vector.load %arg4[%c0_8, %c0_9] : memref<1x384xf32, #tpu.memory_space<vmem>>, vector<1x384xf32>
    %10 = vector.shape_cast %9 : vector<1x384xf32> to vector<1x384xf32>
    %11 = vector.broadcast %10 : vector<1x384xf32> to vector<2x384xf32>
    %cst_10 = arith.constant 0.000000e+00 : f32
    %12 = vector.broadcast %cst_10 : f32 to vector<2x128xf32>
    %13 = vector.extract_strided_slice %7 {offsets = [0, 0, 0], sizes = [2, 1, 384], strides = [1, 1, 1]} : vector<2x8x384xf32> to vector<2x1x384xf32>
    %14 = vector.shape_cast %13 : vector<2x1x384xf32> to vector<2x384xf32>
    %cst_11 = arith.constant dense<0.000000e+00> : vector<2x384xf32>
    %15 = tpu.matmul %12, %8, %cst_11 {dimension_numbers = #tpu.dot_dimension_numbers<[1], [0], [0], [1], [0, 0, 1, 1], [], []>} : vector<2x128xf32>, vector<128x384xf32>, vector<2x384xf32> -> vector<2x384xf32>
    %16 = arith.addf %15, %11 : vector<2x384xf32>
    %17 = vector.extract_strided_slice %14 {offsets = [0, 0], sizes = [2, 128], strides = [1, 1]} : vector<2x384xf32> to vector<2x128xf32>
    %18 = vector.extract_strided_slice %16 {offsets = [0, 0], sizes = [2, 128], strides = [1, 1]} : vector<2x384xf32> to vector<2x128xf32>
    %19 = arith.addf %17, %18 : vector<2x128xf32>
    %20 = arith.negf %19 : vector<2x128xf32>
    %21 = math.exp %20 : vector<2x128xf32>
    %cst_12 = arith.constant 1.000000e+00 : f32
    %22 = vector.broadcast %cst_12 : f32 to vector<2x128xf32>
    %23 = arith.addf %22, %21 : vector<2x128xf32>
    %24 = arith.divf %22, %23 : vector<2x128xf32>
    %25 = vector.extract_strided_slice %14 {offsets = [0, 128], sizes = [2, 128], strides = [1, 1]} : vector<2x384xf32> to vector<2x128xf32>
    %26 = vector.extract_strided_slice %16 {offsets = [0, 128], sizes = [2, 128], strides = [1, 1]} : vector<2x384xf32> to vector<2x128xf32>
    %27 = arith.addf %25, %26 : vector<2x128xf32>
    %28 = arith.negf %27 : vector<2x128xf32>
    %29 = math.exp %28 : vector<2x128xf32>
    %cst_13 = arith.constant 1.000000e+00 : f32
    %30 = vector.broadcast %cst_13 : f32 to vector<2x128xf32>
    %31 = arith.addf %30, %29 : vector<2x128xf32>
    %32 = arith.divf %30, %31 : vector<2x128xf32>
    %33 = vector.extract_strided_slice %14 {offsets = [0, 256], sizes = [2, 128], strides = [1, 1]} : vector<2x384xf32> to vector<2x128xf32>
    %34 = vector.extract_strided_slice %16 {offsets = [0, 256], sizes = [2, 128], strides = [1, 1]} : vector<2x384xf32> to vector<2x128xf32>
    %35 = arith.mulf %24, %34 : vector<2x128xf32>
    %36 = arith.addf %33, %35 : vector<2x128xf32>
    %37 = math.tanh %36 : vector<2x128xf32>
    %cst_14 = arith.constant 1.000000e+00 : f32
    %38 = vector.broadcast %cst_14 : f32 to vector<2x128xf32>
    %39 = arith.subf %38, %32 : vector<2x128xf32>
    %40 = arith.mulf %39, %37 : vector<2x128xf32>
    %41 = arith.mulf %32, %12 : vector<2x128xf32>
    %42 = arith.addf %40, %41 : vector<2x128xf32>
    %43 = vector.extract_strided_slice %7 {offsets = [0, 1, 0], sizes = [2, 1, 384], strides = [1, 1, 1]} : vector<2x8x384xf32> to vector<2x1x384xf32>
    %44 = vector.shape_cast %43 : vector<2x1x384xf32> to vector<2x384xf32>
    %cst_15 = arith.constant dense<0.000000e+00> : vector<2x384xf32>
    %45 = tpu.matmul %42, %8, %cst_15 {dimension_numbers = #tpu.dot_dimension_numbers<[1], [0], [0], [1], [0, 0, 1, 1], [], []>} : vector<2x128xf32>, vector<128x384xf32>, vector<2x384xf32> -> vector<2x384xf32>
    %46 = arith.addf %45, %11 : vector<2x384xf32>
    %47 = vector.extract_strided_slice %44 {offsets = [0, 0], sizes = [2, 128], strides = [1, 1]} : vector<2x384xf32> to vector<2x128xf32>
    %48 = vector.extract_strided_slice %46 {offsets = [0, 0], sizes = [2, 128], strides = [1, 1]} : vector<2x384xf32> to vector<2x128xf32>
    %49 = arith.addf %47, %48 : vector<2x128xf32>
    %50 = arith.negf %49 : vector<2x128xf32>
    %51 = math.exp %50 : vector<2x128xf32>
    %cst_16 = arith.constant 1.000000e+00 : f32
    %52 = vector.broadcast %cst_16 : f32 to vector<2x128xf32>
    %53 = arith.addf %52, %51 : vector<2x128xf32>
    %54 = arith.divf %52, %53 : vector<2x128xf32>
    %55 = vector.extract_strided_slice %44 {offsets = [0, 128], sizes = [2, 128], strides = [1, 1]} : vector<2x384xf32> to vector<2x128xf32>
    %56 = vector.extract_strided_slice %46 {offsets = [0, 128], sizes = [2, 128], strides = [1, 1]} : vector<2x384xf32> to vector<2x128xf32>
    %57 = arith.addf %55, %56 : vector<2x128xf32>
    %58 = arith.negf %57 : vector<2x128xf32>
    %59 = math.exp %58 : vector<2x128xf32>
    %cst_17 = arith.constant 1.000000e+00 : f32
    %60 = vector.broadcast %cst_17 : f32 to vector<2x128xf32>
    %61 = arith.addf %60, %59 : vector<2x128xf32>
    %62 = arith.divf %60, %61 : vector<2x128xf32>
    %63 = vector.extract_strided_slice %44 {offsets = [0, 256], sizes = [2, 128], strides = [1, 1]} : vector<2x384xf32> to vector<2x128xf32>
    %64 = vector.extract_strided_slice %46 {offsets = [0, 256], sizes = [2, 128], strides = [1, 1]} : vector<2x384xf32> to vector<2x128xf32>
    %65 = arith.mulf %54, %64 : vector<2x128xf32>
    %66 = arith.addf %63, %65 : vector<2x128xf32>
    %67 = math.tanh %66 : vector<2x128xf32>
    %cst_18 = arith.constant 1.000000e+00 : f32
    %68 = vector.broadcast %cst_18 : f32 to vector<2x128xf32>
    %69 = arith.subf %68, %62 : vector<2x128xf32>
    %70 = arith.mulf %69, %67 : vector<2x128xf32>
    %71 = arith.mulf %62, %42 : vector<2x128xf32>
    %72 = arith.addf %70, %71 : vector<2x128xf32>
    %73 = vector.extract_strided_slice %7 {offsets = [0, 2, 0], sizes = [2, 1, 384], strides = [1, 1, 1]} : vector<2x8x384xf32> to vector<2x1x384xf32>
    %74 = vector.shape_cast %73 : vector<2x1x384xf32> to vector<2x384xf32>
    %cst_19 = arith.constant dense<0.000000e+00> : vector<2x384xf32>
    %75 = tpu.matmul %72, %8, %cst_19 {dimension_numbers = #tpu.dot_dimension_numbers<[1], [0], [0], [1], [0, 0, 1, 1], [], []>} : vector<2x128xf32>, vector<128x384xf32>, vector<2x384xf32> -> vector<2x384xf32>
    %76 = arith.addf %75, %11 : vector<2x384xf32>
    %77 = vector.extract_strided_slice %74 {offsets = [0, 0], sizes = [2, 128], strides = [1, 1]} : vector<2x384xf32> to vector<2x128xf32>
    %78 = vector.extract_strided_slice %76 {offsets = [0, 0], sizes = [2, 128], strides = [1, 1]} : vector<2x384xf32> to vector<2x128xf32>
    %79 = arith.addf %77, %78 : vector<2x128xf32>
    %80 = arith.negf %79 : vector<2x128xf32>
    %81 = math.exp %80 : vector<2x128xf32>
    %cst_20 = arith.constant 1.000000e+00 : f32
    %82 = vector.broadcast %cst_20 : f32 to vector<2x128xf32>
    %83 = arith.addf %82, %81 : vector<2x128xf32>
    %84 = arith.divf %82, %83 : vector<2x128xf32>
    %85 = vector.extract_strided_slice %74 {offsets = [0, 128], sizes = [2, 128], strides = [1, 1]} : vector<2x384xf32> to vector<2x128xf32>
    %86 = vector.extract_strided_slice %76 {offsets = [0, 128], sizes = [2, 128], strides = [1, 1]} : vector<2x384xf32> to vector<2x128xf32>
    %87 = arith.addf %85, %86 : vector<2x128xf32>
    %88 = arith.negf %87 : vector<2x128xf32>
    %89 = math.exp %88 : vector<2x128xf32>
    %cst_21 = arith.constant 1.000000e+00 : f32
    %90 = vector.broadcast %cst_21 : f32 to vector<2x128xf32>
    %91 = arith.addf %90, %89 : vector<2x128xf32>
    %92 = arith.divf %90, %91 : vector<2x128xf32>
    %93 = vector.extract_strided_slice %74 {offsets = [0, 256], sizes = [2, 128], strides = [1, 1]} : vector<2x384xf32> to vector<2x128xf32>
    %94 = vector.extract_strided_slice %76 {offsets = [0, 256], sizes = [2, 128], strides = [1, 1]} : vector<2x384xf32> to vector<2x128xf32>
    %95 = arith.mulf %84, %94 : vector<2x128xf32>
    %96 = arith.addf %93, %95 : vector<2x128xf32>
    %97 = math.tanh %96 : vector<2x128xf32>
    %cst_22 = arith.constant 1.000000e+00 : f32
    %98 = vector.broadcast %cst_22 : f32 to vector<2x128xf32>
    %99 = arith.subf %98, %92 : vector<2x128xf32>
    %100 = arith.mulf %99, %97 : vector<2x128xf32>
    %101 = arith.mulf %92, %72 : vector<2x128xf32>
    %102 = arith.addf %100, %101 : vector<2x128xf32>
    %103 = vector.extract_strided_slice %7 {offsets = [0, 3, 0], sizes = [2, 1, 384], strides = [1, 1, 1]} : vector<2x8x384xf32> to vector<2x1x384xf32>
    %104 = vector.shape_cast %103 : vector<2x1x384xf32> to vector<2x384xf32>
    %cst_23 = arith.constant dense<0.000000e+00> : vector<2x384xf32>
    %105 = tpu.matmul %102, %8, %cst_23 {dimension_numbers = #tpu.dot_dimension_numbers<[1], [0], [0], [1], [0, 0, 1, 1], [], []>} : vector<2x128xf32>, vector<128x384xf32>, vector<2x384xf32> -> vector<2x384xf32>
    %106 = arith.addf %105, %11 : vector<2x384xf32>
    %107 = vector.extract_strided_slice %104 {offsets = [0, 0], sizes = [2, 128], strides = [1, 1]} : vector<2x384xf32> to vector<2x128xf32>
    %108 = vector.extract_strided_slice %106 {offsets = [0, 0], sizes = [2, 128], strides = [1, 1]} : vector<2x384xf32> to vector<2x128xf32>
    %109 = arith.addf %107, %108 : vector<2x128xf32>
    %110 = arith.negf %109 : vector<2x128xf32>
    %111 = math.exp %110 : vector<2x128xf32>
    %cst_24 = arith.constant 1.000000e+00 : f32
    %112 = vector.broadcast %cst_24 : f32 to vector<2x128xf32>
    %113 = arith.addf %112, %111 : vector<2x128xf32>
    %114 = arith.divf %112, %113 : vector<2x128xf32>
    %115 = vector.extract_strided_slice %104 {offsets = [0, 128], sizes = [2, 128], strides = [1, 1]} : vector<2x384xf32> to vector<2x128xf32>
    %116 = vector.extract_strided_slice %106 {offsets = [0, 128], sizes = [2, 128], strides = [1, 1]} : vector<2x384xf32> to vector<2x128xf32>
    %117 = arith.addf %115, %116 : vector<2x128xf32>
    %118 = arith.negf %117 : vector<2x128xf32>
    %119 = math.exp %118 : vector<2x128xf32>
    %cst_25 = arith.constant 1.000000e+00 : f32
    %120 = vector.broadcast %cst_25 : f32 to vector<2x128xf32>
    %121 = arith.addf %120, %119 : vector<2x128xf32>
    %122 = arith.divf %120, %121 : vector<2x128xf32>
    %123 = vector.extract_strided_slice %104 {offsets = [0, 256], sizes = [2, 128], strides = [1, 1]} : vector<2x384xf32> to vector<2x128xf32>
    %124 = vector.extract_strided_slice %106 {offsets = [0, 256], sizes = [2, 128], strides = [1, 1]} : vector<2x384xf32> to vector<2x128xf32>
    %125 = arith.mulf %114, %124 : vector<2x128xf32>
    %126 = arith.addf %123, %125 : vector<2x128xf32>
    %127 = math.tanh %126 : vector<2x128xf32>
    %cst_26 = arith.constant 1.000000e+00 : f32
    %128 = vector.broadcast %cst_26 : f32 to vector<2x128xf32>
    %129 = arith.subf %128, %122 : vector<2x128xf32>
    %130 = arith.mulf %129, %127 : vector<2x128xf32>
    %131 = arith.mulf %122, %102 : vector<2x128xf32>
    %132 = arith.addf %130, %131 : vector<2x128xf32>
    %133 = vector.extract_strided_slice %7 {offsets = [0, 4, 0], sizes = [2, 1, 384], strides = [1, 1, 1]} : vector<2x8x384xf32> to vector<2x1x384xf32>
    %134 = vector.shape_cast %133 : vector<2x1x384xf32> to vector<2x384xf32>
    %cst_27 = arith.constant dense<0.000000e+00> : vector<2x384xf32>
    %135 = tpu.matmul %132, %8, %cst_27 {dimension_numbers = #tpu.dot_dimension_numbers<[1], [0], [0], [1], [0, 0, 1, 1], [], []>} : vector<2x128xf32>, vector<128x384xf32>, vector<2x384xf32> -> vector<2x384xf32>
    %136 = arith.addf %135, %11 : vector<2x384xf32>
    %137 = vector.extract_strided_slice %134 {offsets = [0, 0], sizes = [2, 128], strides = [1, 1]} : vector<2x384xf32> to vector<2x128xf32>
    %138 = vector.extract_strided_slice %136 {offsets = [0, 0], sizes = [2, 128], strides = [1, 1]} : vector<2x384xf32> to vector<2x128xf32>
    %139 = arith.addf %137, %138 : vector<2x128xf32>
    %140 = arith.negf %139 : vector<2x128xf32>
    %141 = math.exp %140 : vector<2x128xf32>
    %cst_28 = arith.constant 1.000000e+00 : f32
    %142 = vector.broadcast %cst_28 : f32 to vector<2x128xf32>
    %143 = arith.addf %142, %141 : vector<2x128xf32>
    %144 = arith.divf %142, %143 : vector<2x128xf32>
    %145 = vector.extract_strided_slice %134 {offsets = [0, 128], sizes = [2, 128], strides = [1, 1]} : vector<2x384xf32> to vector<2x128xf32>
    %146 = vector.extract_strided_slice %136 {offsets = [0, 128], sizes = [2, 128], strides = [1, 1]} : vector<2x384xf32> to vector<2x128xf32>
    %147 = arith.addf %145, %146 : vector<2x128xf32>
    %148 = arith.negf %147 : vector<2x128xf32>
    %149 = math.exp %148 : vector<2x128xf32>
    %cst_29 = arith.constant 1.000000e+00 : f32
    %150 = vector.broadcast %cst_29 : f32 to vector<2x128xf32>
    %151 = arith.addf %150, %149 : vector<2x128xf32>
    %152 = arith.divf %150, %151 : vector<2x128xf32>
    %153 = vector.extract_strided_slice %134 {offsets = [0, 256], sizes = [2, 128], strides = [1, 1]} : vector<2x384xf32> to vector<2x128xf32>
    %154 = vector.extract_strided_slice %136 {offsets = [0, 256], sizes = [2, 128], strides = [1, 1]} : vector<2x384xf32> to vector<2x128xf32>
    %155 = arith.mulf %144, %154 : vector<2x128xf32>
    %156 = arith.addf %153, %155 : vector<2x128xf32>
    %157 = math.tanh %156 : vector<2x128xf32>
    %cst_30 = arith.constant 1.000000e+00 : f32
    %158 = vector.broadcast %cst_30 : f32 to vector<2x128xf32>
    %159 = arith.subf %158, %152 : vector<2x128xf32>
    %160 = arith.mulf %159, %157 : vector<2x128xf32>
    %161 = arith.mulf %152, %132 : vector<2x128xf32>
    %162 = arith.addf %160, %161 : vector<2x128xf32>
    %163 = vector.extract_strided_slice %7 {offsets = [0, 5, 0], sizes = [2, 1, 384], strides = [1, 1, 1]} : vector<2x8x384xf32> to vector<2x1x384xf32>
    %164 = vector.shape_cast %163 : vector<2x1x384xf32> to vector<2x384xf32>
    %cst_31 = arith.constant dense<0.000000e+00> : vector<2x384xf32>
    %165 = tpu.matmul %162, %8, %cst_31 {dimension_numbers = #tpu.dot_dimension_numbers<[1], [0], [0], [1], [0, 0, 1, 1], [], []>} : vector<2x128xf32>, vector<128x384xf32>, vector<2x384xf32> -> vector<2x384xf32>
    %166 = arith.addf %165, %11 : vector<2x384xf32>
    %167 = vector.extract_strided_slice %164 {offsets = [0, 0], sizes = [2, 128], strides = [1, 1]} : vector<2x384xf32> to vector<2x128xf32>
    %168 = vector.extract_strided_slice %166 {offsets = [0, 0], sizes = [2, 128], strides = [1, 1]} : vector<2x384xf32> to vector<2x128xf32>
    %169 = arith.addf %167, %168 : vector<2x128xf32>
    %170 = arith.negf %169 : vector<2x128xf32>
    %171 = math.exp %170 : vector<2x128xf32>
    %cst_32 = arith.constant 1.000000e+00 : f32
    %172 = vector.broadcast %cst_32 : f32 to vector<2x128xf32>
    %173 = arith.addf %172, %171 : vector<2x128xf32>
    %174 = arith.divf %172, %173 : vector<2x128xf32>
    %175 = vector.extract_strided_slice %164 {offsets = [0, 128], sizes = [2, 128], strides = [1, 1]} : vector<2x384xf32> to vector<2x128xf32>
    %176 = vector.extract_strided_slice %166 {offsets = [0, 128], sizes = [2, 128], strides = [1, 1]} : vector<2x384xf32> to vector<2x128xf32>
    %177 = arith.addf %175, %176 : vector<2x128xf32>
    %178 = arith.negf %177 : vector<2x128xf32>
    %179 = math.exp %178 : vector<2x128xf32>
    %cst_33 = arith.constant 1.000000e+00 : f32
    %180 = vector.broadcast %cst_33 : f32 to vector<2x128xf32>
    %181 = arith.addf %180, %179 : vector<2x128xf32>
    %182 = arith.divf %180, %181 : vector<2x128xf32>
    %183 = vector.extract_strided_slice %164 {offsets = [0, 256], sizes = [2, 128], strides = [1, 1]} : vector<2x384xf32> to vector<2x128xf32>
    %184 = vector.extract_strided_slice %166 {offsets = [0, 256], sizes = [2, 128], strides = [1, 1]} : vector<2x384xf32> to vector<2x128xf32>
    %185 = arith.mulf %174, %184 : vector<2x128xf32>
    %186 = arith.addf %183, %185 : vector<2x128xf32>
    %187 = math.tanh %186 : vector<2x128xf32>
    %cst_34 = arith.constant 1.000000e+00 : f32
    %188 = vector.broadcast %cst_34 : f32 to vector<2x128xf32>
    %189 = arith.subf %188, %182 : vector<2x128xf32>
    %190 = arith.mulf %189, %187 : vector<2x128xf32>
    %191 = arith.mulf %182, %162 : vector<2x128xf32>
    %192 = arith.addf %190, %191 : vector<2x128xf32>
    %193 = vector.extract_strided_slice %7 {offsets = [0, 6, 0], sizes = [2, 1, 384], strides = [1, 1, 1]} : vector<2x8x384xf32> to vector<2x1x384xf32>
    %194 = vector.shape_cast %193 : vector<2x1x384xf32> to vector<2x384xf32>
    %cst_35 = arith.constant dense<0.000000e+00> : vector<2x384xf32>
    %195 = tpu.matmul %192, %8, %cst_35 {dimension_numbers = #tpu.dot_dimension_numbers<[1], [0], [0], [1], [0, 0, 1, 1], [], []>} : vector<2x128xf32>, vector<128x384xf32>, vector<2x384xf32> -> vector<2x384xf32>
    %196 = arith.addf %195, %11 : vector<2x384xf32>
    %197 = vector.extract_strided_slice %194 {offsets = [0, 0], sizes = [2, 128], strides = [1, 1]} : vector<2x384xf32> to vector<2x128xf32>
    %198 = vector.extract_strided_slice %196 {offsets = [0, 0], sizes = [2, 128], strides = [1, 1]} : vector<2x384xf32> to vector<2x128xf32>
    %199 = arith.addf %197, %198 : vector<2x128xf32>
    %200 = arith.negf %199 : vector<2x128xf32>
    %201 = math.exp %200 : vector<2x128xf32>
    %cst_36 = arith.constant 1.000000e+00 : f32
    %202 = vector.broadcast %cst_36 : f32 to vector<2x128xf32>
    %203 = arith.addf %202, %201 : vector<2x128xf32>
    %204 = arith.divf %202, %203 : vector<2x128xf32>
    %205 = vector.extract_strided_slice %194 {offsets = [0, 128], sizes = [2, 128], strides = [1, 1]} : vector<2x384xf32> to vector<2x128xf32>
    %206 = vector.extract_strided_slice %196 {offsets = [0, 128], sizes = [2, 128], strides = [1, 1]} : vector<2x384xf32> to vector<2x128xf32>
    %207 = arith.addf %205, %206 : vector<2x128xf32>
    %208 = arith.negf %207 : vector<2x128xf32>
    %209 = math.exp %208 : vector<2x128xf32>
    %cst_37 = arith.constant 1.000000e+00 : f32
    %210 = vector.broadcast %cst_37 : f32 to vector<2x128xf32>
    %211 = arith.addf %210, %209 : vector<2x128xf32>
    %212 = arith.divf %210, %211 : vector<2x128xf32>
    %213 = vector.extract_strided_slice %194 {offsets = [0, 256], sizes = [2, 128], strides = [1, 1]} : vector<2x384xf32> to vector<2x128xf32>
    %214 = vector.extract_strided_slice %196 {offsets = [0, 256], sizes = [2, 128], strides = [1, 1]} : vector<2x384xf32> to vector<2x128xf32>
    %215 = arith.mulf %204, %214 : vector<2x128xf32>
    %216 = arith.addf %213, %215 : vector<2x128xf32>
    %217 = math.tanh %216 : vector<2x128xf32>
    %cst_38 = arith.constant 1.000000e+00 : f32
    %218 = vector.broadcast %cst_38 : f32 to vector<2x128xf32>
    %219 = arith.subf %218, %212 : vector<2x128xf32>
    %220 = arith.mulf %219, %217 : vector<2x128xf32>
    %221 = arith.mulf %212, %192 : vector<2x128xf32>
    %222 = arith.addf %220, %221 : vector<2x128xf32>
    %223 = vector.extract_strided_slice %7 {offsets = [0, 7, 0], sizes = [2, 1, 384], strides = [1, 1, 1]} : vector<2x8x384xf32> to vector<2x1x384xf32>
    %224 = vector.shape_cast %223 : vector<2x1x384xf32> to vector<2x384xf32>
    %cst_39 = arith.constant dense<0.000000e+00> : vector<2x384xf32>
    %225 = tpu.matmul %222, %8, %cst_39 {dimension_numbers = #tpu.dot_dimension_numbers<[1], [0], [0], [1], [0, 0, 1, 1], [], []>} : vector<2x128xf32>, vector<128x384xf32>, vector<2x384xf32> -> vector<2x384xf32>
    %226 = arith.addf %225, %11 : vector<2x384xf32>
    %227 = vector.extract_strided_slice %224 {offsets = [0, 0], sizes = [2, 128], strides = [1, 1]} : vector<2x384xf32> to vector<2x128xf32>
    %228 = vector.extract_strided_slice %226 {offsets = [0, 0], sizes = [2, 128], strides = [1, 1]} : vector<2x384xf32> to vector<2x128xf32>
    %229 = arith.addf %227, %228 : vector<2x128xf32>
    %230 = arith.negf %229 : vector<2x128xf32>
    %231 = math.exp %230 : vector<2x128xf32>
    %cst_40 = arith.constant 1.000000e+00 : f32
    %232 = vector.broadcast %cst_40 : f32 to vector<2x128xf32>
    %233 = arith.addf %232, %231 : vector<2x128xf32>
    %234 = arith.divf %232, %233 : vector<2x128xf32>
    %235 = vector.extract_strided_slice %224 {offsets = [0, 128], sizes = [2, 128], strides = [1, 1]} : vector<2x384xf32> to vector<2x128xf32>
    %236 = vector.extract_strided_slice %226 {offsets = [0, 128], sizes = [2, 128], strides = [1, 1]} : vector<2x384xf32> to vector<2x128xf32>
    %237 = arith.addf %235, %236 : vector<2x128xf32>
    %238 = arith.negf %237 : vector<2x128xf32>
    %239 = math.exp %238 : vector<2x128xf32>
    %cst_41 = arith.constant 1.000000e+00 : f32
    %240 = vector.broadcast %cst_41 : f32 to vector<2x128xf32>
    %241 = arith.addf %240, %239 : vector<2x128xf32>
    %242 = arith.divf %240, %241 : vector<2x128xf32>
    %243 = vector.extract_strided_slice %224 {offsets = [0, 256], sizes = [2, 128], strides = [1, 1]} : vector<2x384xf32> to vector<2x128xf32>
    %244 = vector.extract_strided_slice %226 {offsets = [0, 256], sizes = [2, 128], strides = [1, 1]} : vector<2x384xf32> to vector<2x128xf32>
    %245 = arith.mulf %234, %244 : vector<2x128xf32>
    %246 = arith.addf %243, %245 : vector<2x128xf32>
    %247 = math.tanh %246 : vector<2x128xf32>
    %cst_42 = arith.constant 1.000000e+00 : f32
    %248 = vector.broadcast %cst_42 : f32 to vector<2x128xf32>
    %249 = arith.subf %248, %242 : vector<2x128xf32>
    %250 = arith.mulf %249, %247 : vector<2x128xf32>
    %251 = arith.mulf %242, %222 : vector<2x128xf32>
    %252 = arith.addf %250, %251 : vector<2x128xf32>
    %cst_43 = arith.constant 0.000000e+00 : f32
    %253 = vector.broadcast %cst_43 : f32 to vector<2x128xf32>
    %254 = arith.cmpf oge, %252, %253 : vector<2x128xf32>
    %cst_44 = arith.constant 0.00999999977 : f32
    %255 = vector.broadcast %cst_44 : f32 to vector<2x128xf32>
    %256 = arith.mulf %255, %252 : vector<2x128xf32>
    %257 = arith.select %254, %252, %256 : vector<2x128xi1>, vector<2x128xf32>
    %c0_45 = arith.constant 0 : index
    %c0_46 = arith.constant 0 : index
    %258 = vector.load %arg5[%c0_45, %c0_46] : memref<128x128xf32, #tpu.memory_space<vmem>>, vector<128x128xf32>
    %cst_47 = arith.constant dense<0.000000e+00> : vector<2x128xf32>
    %259 = tpu.matmul %257, %258, %cst_47 {dimension_numbers = #tpu.dot_dimension_numbers<[1], [0], [0], [1], [0, 0, 1, 1], [], []>} : vector<2x128xf32>, vector<128x128xf32>, vector<2x128xf32> -> vector<2x128xf32>
    %c0_48 = arith.constant 0 : index
    %c0_49 = arith.constant 0 : index
    %260 = vector.load %arg6[%c0_48, %c0_49] : memref<1x128xf32, #tpu.memory_space<vmem>>, vector<1x128xf32>
    %261 = vector.broadcast %260 : vector<1x128xf32> to vector<2x128xf32>
    %262 = arith.addf %259, %261 : vector<2x128xf32>
    %cst_50 = arith.constant 0.000000e+00 : f32
    %263 = vector.broadcast %cst_50 : f32 to vector<2x128xf32>
    %264 = arith.cmpf oge, %262, %263 : vector<2x128xf32>
    %cst_51 = arith.constant 0.00999999977 : f32
    %265 = vector.broadcast %cst_51 : f32 to vector<2x128xf32>
    %266 = arith.mulf %265, %262 : vector<2x128xf32>
    %267 = arith.select %264, %262, %266 : vector<2x128xi1>, vector<2x128xf32>
    %c0_52 = arith.constant 0 : index
    %c0_53 = arith.constant 0 : index
    %268 = vector.load %arg7[%c0_52, %c0_53] : memref<2x128xf32, #tpu.memory_space<vmem>>, vector<2x128xf32>
    tpu.vector_store %arg7[%c0_52, %c0_53], %267 {strides = array<i32>} : memref<2x128xf32, #tpu.memory_space<vmem>>, vector<2x128xf32>,
    return
  }
}

</mosaic_0001>

<bundles_post_ra>
// kernel: tpu_custom_call.1
= control target key start
LH: loop header
LB: loop body
LE: loop exit
PB: predicated region body
PF: predicated region fallthrough
CT: control target
= control target key end

     0   :  { %12 = vsyncpa [#allocation3], 0  ;;  %s3985_s0 = inlined_call_operand.hbm [shape: f32[2,8,50], index: 0, kind: input, shape index: {}]   ;;  %s3986_s1 = inlined_call_operand.hbm [shape: f32[50,384], index: 1, kind: input, shape index: {}]   ;;  %s3987_s2 = inlined_call_operand.hbm [shape: f32[128,384], index: 2, kind: input, shape index: {}]   ;;  %s3988_s3 = inlined_call_operand.vmem [shape: f32[1,384], index: 3, kind: input, shape index: {}]   ;;  %s3989_s4 = inlined_call_operand.vmem [shape: f32[1,384], index: 4, kind: input, shape index: {}]   ;;  %s3990_s5 = inlined_call_operand.hbm [shape: f32[128,128], index: 5, kind: input, shape index: {}]   ;;  %s3991_s6 = inlined_call_operand.vmem [shape: f32[1,128], index: 6, kind: input, shape index: {}]   ;;  %s3992_s7 = inlined_call_operand.hbm [shape: f32[2,128], index: 7, kind: output, shape index: {}]  }
   0x1   :  { %13 = vsyncpa [#allocation6], 0 }
   0x2   :  { %14 = vsyncpa [#allocation9], 0 }
   0x3   :  { %15 = vsyncpa [#allocation4], 0  ;;  %s2989_s24 = smov [#allocation5]  }
   0x4   :  { %s33_s25 = sshll.u32 %s2989_s24, 4  ;;  %s34_s25 = int_to_ptr.vmem [resolvable:$true] %s33_s25 }
   0x5   :  { %s2889_s26 = scalar_lea.vmem %s34_s25, 2688  ;;  %p2894_p1 = scmp.lt.s32.totalorder %s34_s25, %s34_s25 }
   0x6   :  { %p2890_p0 = scmp.ne.s32.totalorder %s34_s25, %s2889_s26  ;;  %p2895_p2 = scmp.lt.s32.totalorder %s2889_s26, %s2889_s26 }
   0x8   :  { %p2896_p3 = por %p2895_p2, %p2894_p1 }
   0xa   :  { %p2897_p4 = pnand %p2896_p3, %p2890_p0 }
   0xc   :  { %2900 = shalt.err (!%p2897_p4)
}
   0xd   :  { %s2990_s27 = smov 384   ;;  %s2991_s28 = smov 24  }
   0xe   :  { %39 = dma.hbm_to_vmem [thread:$0]  %s3986_s1, 2688, %s34_s25, [#allocation6], %s2990_s27, %s2990_s27, %s2991_s28  }
   0xf   :  { %s2992_s8 = smov [#allocation2]  }
  0x10   :  { %s21_s9 = sshll.u32 %s2992_s8, 4  ;;  %s22_s9 = int_to_ptr.vmem [resolvable:$true] %s21_s9 }
  0x11   :  { %s2909_s10 = scalar_lea.vmem %s22_s9, 256  ;;  %p2914_p6 = scmp.lt.s32.totalorder %s22_s9, %s22_s9 }
  0x12   :  { %p2910_p5 = scmp.ne.s32.totalorder %s22_s9, %s2909_s10  ;;  %p2915_p7 = scmp.lt.s32.totalorder %s2909_s10, %s2909_s10 }
  0x14   :  { %p2916_p8 = por %p2915_p7, %p2914_p6 }
  0x16   :  { %p2917_p9 = pnand %p2916_p8, %p2910_p5 }
  0x18   :  { %2920 = shalt.err (!%p2917_p9)
}
  0x19   :  { %s2993_s11 = smov 128   ;;  %s2994_s12 = smov 8  }
  0x1a   :  { %27 = dma.hbm_to_vmem [thread:$0]  %s3985_s0, 256, %s22_s9, [#allocation3], %s2993_s11, %s2993_s11, %s2994_s12  }
  0x1b   :  { %s2995_s15 = smov [#allocation7]   ;;  %s2996_s17 = smov [#allocation8]  }
  0x1c   :  { %s45_s16 = sshll.u32 %s2995_s15, 4  ;;  %s61_s1 = sshll.u32 %s2996_s17, 4  ;;  %s46_s16 = int_to_ptr.vmem [resolvable:$true] %s45_s16  ;;  %s62_s1 = int_to_ptr.vmem [resolvable:$true] %s61_s1 }
  0x1d   :  { %s2929_s18 = scalar_lea.vmem %s46_s16, 6144  ;;  %p2934_p11 = scmp.lt.s32.totalorder %s46_s16, %s46_s16 }
  0x1e   :  { %p2930_p10 = scmp.ne.s32.totalorder %s46_s16, %s2929_s18  ;;  %p2935_p12 = scmp.lt.s32.totalorder %s2929_s18, %s2929_s18 }
  0x20   :  { %p2936_p13 = por %p2935_p12, %p2934_p11 }
  0x22   :  { %p2937_p0 = pnand %p2936_p13, %p2930_p10 }
  0x24   :  { %2940 = shalt.err (!%p2937_p0)
}
  0x25   :  { %51 = dma.hbm_to_vmem [thread:$0]  %s3987_s2, 6144, %s46_s16, [#allocation6], %s2990_s27, %s2990_s27, %s2991_s28  }
  0x26   :  { %s2949_s0 = scalar_lea.vmem %s62_s1, 2048  ;;  %p2954_p2 = scmp.lt.s32.totalorder %s62_s1, %s62_s1 }
  0x27   :  { %p2950_p1 = scmp.ne.s32.totalorder %s62_s1, %s2949_s0  ;;  %p2955_p3 = scmp.lt.s32.totalorder %s2949_s0, %s2949_s0 }
  0x29   :  { %p2956_p4 = por %p2955_p3, %p2954_p2 }
  0x2b   :  { %p2957_p5 = pnand %p2956_p4, %p2950_p1 }
  0x2d   :  { %2960 = shalt.err (!%p2957_p5)
}
  0x2e   :  { %67 = dma.hbm_to_vmem [thread:$0]  %s3990_s5, 2048, %s62_s1, [#allocation9], %s2993_s11, %s2993_s11, %s2994_s12  }
  0x2f   :  { %2981 = dma.done.wait [#allocation3], 256  }
  0x30   :  { %2982 = vsyncadd [#allocation3], 4294967040 }
  0x31   :  { %2983 = dma.done.wait [#allocation6], 8832  }
  0x32   :  { %2984 = vsyncadd [#allocation6], 4294958464 }
  0x33   :  { %2985 = dma.done.wait [#allocation9], 2048  }
  0x34   :  { %2986 = vsyncadd [#allocation9], 4294965248  ;;  %v3993_v0 = vmov 0.0   ;;  %vm129_vm0 = vcmask 1041408   ;;  %v3060_v1 = vld [vmem:[#allocation7 + $0x170] sm:$0xff]  ;;  %v3062_v2 = vld [vmem:[#allocation7 + $0x168] sm:$0xff] }
  0x35   :  { %203 = vmatprep.mubr.f32.mxu1 %v3993_v0  ;;  %420 = vmatprep.mubr.f32.mxu0 %v3993_v0  ;;  %4050 = vst [vmem:[#allocation15_spill] sm:$0xff] %v3060_v1  ;;  %v3064_v3 = vld [vmem:[#allocation7 + $0x158] sm:$0xff]  ;;  %v3067_v4 = vld [vmem:[#allocation7 + $0x150] sm:$0xff]  ;;  %v3071_v6 = vld [vmem:[#allocation7 + $0x140] sm:$0xff]  ;;  %vm122_vm1 = vcmask 408576   ;;  %vm2998_vm2 = vmmov 0  }
  0x36   :  { %356 = vmatprep.subr.mxu0 %v3060_v1  ;;  %v103_v5 = vld [vmem:[#allocation5 + $0x98] sm:$0x3]  ;;  %v102_v7 = vld [vmem:[#allocation5 + $0x90] sm:$0x3]  ;;  %v100_v8 = vld [vmem:[#allocation5 + $0x80] sm:$0xff]  ;;  %vm554_vm3 = vcmask 1041409  }
  0x37   :  { %357 = vmatpush1.msra.mxu0 %v3062_v2  ;;  %2128 = vmatprep.subr.msk.mxu1 %vm129_vm0, %v103_v5  ;;  %v3075_v9 = vld [vmem:[#allocation7 + $0x138] sm:$0xff]  ;;  %v99_v10 = vld [vmem:[#allocation5 + $0x78] sm:$0xff]  ;;  %v3078_v11 = vld [vmem:[#allocation7 + $0x128] sm:$0xff]  ;;  %s2999_s25 = smov [#allocation10]  }
  0x38   :  { %358 = vmatprep.subr.mxu0 %v3064_v3  ;;  %2129 = vmatpush1.msk.msra.mxu1 %vm129_vm0, %v102_v7  ;;  %v97_v12 = vld [vmem:[#allocation5 + $0x68] sm:$0xff]  ;;  %v96_v13 = vld [vmem:[#allocation5 + $0x60] sm:$0xff]  ;;  %v94_v15 = vld [vmem:[#allocation5 + $0x50] sm:$0xff]  ;;  %s2117_s26 = sshll.u32 %s2999_s25, 4  ;;  %s2118_s26 = int_to_ptr.vmem [resolvable:$true] %s2117_s26 }
  0x39   :  { %359 = vmatpush1.msra.mxu0 %v3067_v4  ;;  %159 = vmatprep.subr.mxu1 %v100_v8  ;;  %v3081_v14 = vld [vmem:[#allocation7 + $0x120] sm:$0xff]  ;;  %v3084_v16 = vld [vmem:[#allocation7 + $0x110] sm:$0xff]  ;;  %v3087_v18 = vld [vmem:[#allocation7 + $0x108] sm:$0xff]  ;;  %s2961_s27 = scalar_lea.vmem %s2118_s26, 32  ;;  %p2966_p7 = scmp.lt.s32.totalorder %s2118_s26, %s2118_s26 }
  0x3a   :  { %360 = vmatprep.subr.mxu0 %v3071_v6  ;;  %160 = vmatpush1.msra.mxu1 %v99_v10  ;;  %v93_v17 = vld [vmem:[#allocation5 + $0x48] sm:$0xff]  ;;  %v91_v19 = vld [vmem:[#allocation5 + $0x38] sm:$0xff]  ;;  %v3090_v20 = vld [vmem:[#allocation7 + $0xf8] sm:$0xff]  ;;  %p2962_p6 = scmp.ne.s32.totalorder %s2118_s26, %s2961_s27  ;;  %p2967_p8 = scmp.lt.s32.totalorder %s2961_s27, %s2961_s27 }
  0x3b   :  { %361 = vmatpush1.msra.mxu0 %v3075_v9  ;;  %161 = vmatprep.subr.mxu1 %v97_v12  ;;  %v90_v21 = vld [vmem:[#allocation5 + $0x30] sm:$0xff]  ;;  %v3093_v22 = vld [vmem:[#allocation7 + $0xf0] sm:$0xff]  ;;  %v88_v23 = vld [vmem:[#allocation5 + $0x20] sm:$0xff] }
  0x3c   :  { %362 = vmatprep.subr.mxu0 %v3078_v11  ;;  %162 = vmatpush1.msra.mxu1 %v96_v13  ;;  %v3096_v24 = vld [vmem:[#allocation7 + $0xe0] sm:$0xff]  ;;  %v87_v25 = vld [vmem:[#allocation5 + $0x18] sm:$0xff]  ;;  %v3099_v26 = vld [vmem:[#allocation7 + $0xd8] sm:$0xff]  ;;  %p2968_p9 = por %p2967_p8, %p2966_p7 }
  0x3d   :  { %363 = vmatpush1.msra.mxu0 %v3081_v14  ;;  %163 = vmatprep.subr.mxu1 %v94_v15  ;;  %v85_v27 = vld [vmem:[#allocation5 + $0x8] sm:$0xff]  ;;  %v3102_v28 = vld [vmem:[#allocation7 + $0xc8] sm:$0xff]  ;;  %v84_v29 = vld [vmem:[#allocation5] sm:$0xff] }
  0x3e   :  { %364 = vmatprep.subr.mxu0 %v3084_v16  ;;  %164 = vmatpush1.msra.mxu1 %v93_v17  ;;  %v3105_v30 = vld [vmem:[#allocation7 + $0xc0] sm:$0xff]  ;;  %v104_v31 = vld [vmem:[#allocation5 + $0xa0] sm:$0x3]  ;;  %v3108_v32 = vld [vmem:[#allocation7 + $0xb0] sm:$0xff]  ;;  %p2969_p10 = pnand %p2968_p9, %p2962_p6 }
  0x3f   :  { %365 = vmatpush1.msra.mxu0 %v3087_v18  ;;  %165 = vmatprep.subr.mxu1 %v91_v19  ;;  %v82_v33 = vld [vmem:[#allocation2] sm:$0xff]  ;;  %v3115_v35 = vld [vmem:[#allocation7 + $0x98] sm:$0xff]  ;;  %v101_v36 = vld [vmem:[#allocation5 + $0x88] sm:$0xff]  ;;  %v107_v19 = vlaneseq }
  0x40   :  { %366 = vmatprep.subr.mxu0 %v3090_v20  ;;  %166 = vmatpush1.msra.mxu1 %v90_v21  ;;  %v3111_v34 = vld [vmem:[#allocation7 + $0xa8] sm:$0xff]  ;;  %v3119_v37 = vld [vmem:[#allocation7 + $0x90] sm:$0xff]  ;;  %v3123_v38 = vld [vmem:[#allocation7 + $0x80] sm:$0xff] }
  0x41   :  { %367 = vmatpush1.msra.mxu0 %v3093_v22  ;;  %167 = vmatprep.subr.mxu1 %v88_v23  ;;  %v98_v39 = vld [vmem:[#allocation5 + $0x70] sm:$0xff]  ;;  %v3126_v40 = vld [vmem:[#allocation7 + $0x78] sm:$0xff]  ;;  %v95_v42 = vld [vmem:[#allocation5 + $0x58] sm:$0xff]  ;;  %v108_v21 = vshrl.u32 %v107_v19, 7 }
  0x42   :  { %368 = vmatprep.subr.mxu0 %v3096_v24  ;;  %168 = vmatpush1.msra.mxu1 %v87_v25  ;;  %v3129_v41 = vld [vmem:[#allocation7 + $0x68] sm:$0xff]  ;;  %v3132_v43 = vld [vmem:[#allocation7 + $0x60] sm:$0xff]  ;;  %v3135_v44 = vld [vmem:[#allocation7 + $0x50] sm:$0xff] }
  0x43   :  { %369 = vmatpush1.msra.mxu0 %v3099_v26  ;;  %169 = vmatprep.subr.mxu1 %v85_v27  ;;  %v92_v45 = vld [vmem:[#allocation5 + $0x40] sm:$0xff]  ;;  %v3138_v46 = vld [vmem:[#allocation7 + $0x48] sm:$0xff]  ;;  %v3144_v48 = vld [vmem:[#allocation7 + $0x30] sm:$0xff]  ;;  %v109_v23 = vsub.s32 0, %v108_v21 }
  0x44   :  { %370 = vmatprep.subr.mxu0 %v3102_v28  ;;  %170 = vmatpush1.msra.mxu1 %v84_v29  ;;  %v3141_v47 = vld [vmem:[#allocation7 + $0x38] sm:$0xff]  ;;  %4052 = vst [vmem:[#allocation17_spill] sm:$0xff] %v3144_v48  ;;  %v89_v49 = vld [vmem:[#allocation5 + $0x28] sm:$0xff]  ;;  %v83_v51 = vld [vmem:[#allocation2 + $0x8] sm:$0xff] }
  0x45   :  { %371 = vmatpush1.msra.mxu0 %v3105_v30  ;;  %2330 = vmatprep.subr.msk.mxu1 %vm129_vm0, %v104_v31  ;;  %4051 = vst [vmem:[#allocation16_spill] sm:$0xff] %v3141_v47  ;;  %v3147_v50 = vld [vmem:[#allocation7 + $0x20] sm:$0xff]  ;;  %v3151_v52 = vld [vmem:[#allocation7 + $0x18] sm:$0xff]  ;;  %v86_v53 = vld [vmem:[#allocation5 + $0x10] sm:$0xff] }
  0x46   :  { %372 = vmatprep.subr.mxu0 %v3108_v32  ;;  %2130 = vmatmul.mubr.msk.f32.vlgmr.msra.gmra.mxu1 %vm122_vm1, %v82_v33  ;;  %4053 = vst [vmem:[#allocation18_spill] sm:$0xff] %v3147_v50  ;;  %4054 = vst [vmem:[#allocation19_spill] sm:$0xff] %v3151_v52  ;;  %v3154_v54 = vld [vmem:[#allocation7 + $0x8] sm:$0xff]  ;;  %v3158_v55 = vld [vmem:[#allocation7] sm:$0xff] }
  0x47   :  { %373 = vmatpush1.msra.mxu0 %v3111_v34  ;;  %2331 = vmatpush3.msk.msra.mxu1 %vm129_vm0, %v104_v31  ;;  %4055 = vst [vmem:[#allocation20_spill] sm:$0xff] %v3154_v54  ;;  %4056 = vst [vmem:[#allocation21_spill] sm:$0xff] %v3158_v55  ;;  %v3163_v56 = vld [vmem:[#allocation7 + $0x178] sm:$0xff]  ;;  %v3169_v57 = vld [vmem:[#allocation7 + $0x160] sm:$0xff] }
  0x48   :  { %374 = vmatprep.subr.mxu0 %v3115_v35  ;;  %2332 = vmatprep.subr.mxu1 %v101_v36  ;;  %v3175_v58 = vld [vmem:[#allocation7 + $0x148] sm:$0xff]  ;;  %v3181_v59 = vld [vmem:[#allocation7 + $0x130] sm:$0xff]  ;;  %v3187_v60 = vld [vmem:[#allocation7 + $0x118] sm:$0xff] }
  0x49   :  { %375 = vmatpush1.msra.mxu0 %v3119_v37  ;;  %2333 = vmatpush3.msra.mxu1 %v101_v36  ;;  %v3193_v61 = vld [vmem:[#allocation7 + $0x100] sm:$0xff]  ;;  %v3199_v62 = vld [vmem:[#allocation7 + $0xe8] sm:$0xff]  ;;  %v3205_v63 = vld [vmem:[#allocation7 + $0xd0] sm:$0xff]  ;;  %v113_v36 = vsub.s32 1, %v108_v21 }
  0x4a   :  { %376 = vmatprep.subr.mxu0 %v3123_v38  ;;  %2334 = vmatprep.subr.mxu1 %v98_v39  ;;  %v3211_v5 = vld [vmem:[#allocation7 + $0xb8] sm:$0xff]  ;;  %v3217_v7 = vld [vmem:[#allocation7 + $0xa0] sm:$0xff]  ;;  %v3223_v8 = vld [vmem:[#allocation7 + $0x88] sm:$0xff] }
  0x4b   :  { %377 = vmatpush1.msra.mxu0 %v3126_v40  ;;  %2335 = vmatpush3.msra.mxu1 %v98_v39  ;;  %v3229_v10 = vld [vmem:[#allocation7 + $0x70] sm:$0xff]  ;;  %v3235_v12 = vld [vmem:[#allocation7 + $0x58] sm:$0xff]  ;;  %v3241_v13 = vld [vmem:[#allocation7 + $0x40] sm:$0xff] }
  0x4c   :  { %378 = vmatprep.subr.mxu0 %v3129_v41  ;;  %2336 = vmatprep.subr.mxu1 %v95_v42  ;;  %4057 = vst [vmem:[#allocation22_spill] sm:$0xff] %v3241_v13  ;;  %v3247_v15 = vld [vmem:[#allocation7 + $0x28] sm:$0xff]  ;;  %v3253_v17 = vld [vmem:[#allocation7 + $0x10] sm:$0xff] }
  0x4d   :  { %379 = vmatpush1.msra.mxu0 %v3132_v43  ;;  %2337 = vmatpush3.msra.mxu1 %v95_v42  ;;  %4058 = vst [vmem:[#allocation23_spill] sm:$0xff] %v3247_v15  ;;  %4059 = vst [vmem:[#allocation24_spill] sm:$0xff] %v3253_v17  ;;  %v105_v25 = vld [vmem:[%s3988_s3] sm:$0x7] }
  0x4e   :  { %380 = vmatprep.subr.mxu0 %v3135_v44  ;;  %2338 = vmatprep.subr.mxu1 %v92_v45  ;;  %v339_v27 = vld [vmem:[%s3989_s4] sm:$0x7]  ;;  %v110_v31 = vrot.slane %v105_v25, %v109_v23 }
  0x4f   :  { %381 = vmatpush1.msra.mxu0 %v3138_v46  ;;  %2339 = vmatpush3.msra.mxu1 %v92_v45  ;;  %v3310_v39 = vrot.slane %v339_v27, %v113_v36 }
  0x50   :  { %382 = vmatprep.subr.mxu0 %v3141_v47  ;;  %209 = vmatprep.mubr.f32.mxu1 %v3993_v0 }
  0x51   :  { %383 = vmatpush1.msra.mxu0 %v3144_v48  ;;  %2340 = vmatprep.subr.mxu1 %v89_v49  ;;  %4061 = vst [vmem:[#allocation26_spill] sm:$0xff] %v3310_v39 }
  0x52   :  { %384 = vmatprep.subr.mxu0 %v3147_v50  ;;  %2131 = vmatmul.mubr.msk.f32.gmra.mxu1 %vm122_vm1, %v83_v51 }
  0x53   :  { %2341 = vmatpush3.msra.mxu1 %v89_v49  ;;  %385 = vmatpush1.msra.mxu0 %v3151_v52 }
  0x54   :  { %2342 = vmatprep.subr.mxu1 %v86_v53  ;;  %386 = vmatprep.subr.mxu0 %v3154_v54 }
  0x55   :  { %2343 = vmatpush3.msra.mxu1 %v86_v53  ;;  %387 = vmatpush1.msra.mxu0 %v3158_v55 }
  0x56   :  { %2344 = vmatprep.mubr.msk.f32.mxu1 %vm122_vm1, %v82_v33  ;;  %421 = vmatmul.mubr.f32.vlgmr.msra.gmra.mxu0 %v3993_v0  ;;  %v3308_v33 = vrot.slane %v339_v27, %v109_v23  ;;  %v114_v23 = vrot.slane %v105_v25, %v113_v36 }
  0x57   :  { %2347 = vmatprep.subr.mxu1 %v3993_v0  ;;  %2345 = vmatmul.mubr.msk.f32.vlgmr.msra.gmra.mxu1 %vm122_vm1, %v83_v51 }
  0x58   :  { %2348 = vmatpush3.msra.mxu1 %v3163_v56  ;;  %2379 = vmatprep.mubr.msk.f32.mxu1 %vm2998_vm2, %v3993_v0  ;;  %4060 = vst [vmem:[#allocation25_spill] sm:$0xff] %v3308_v33 }
  0x59   :  { %2349 = vmatprep.subr.mxu1 %v3993_v0  ;;  %557 = vmatprep.subr.mxu0 %v3060_v1 }
  0x5a   :  { %2350 = vmatpush3.msra.mxu1 %v3169_v57  ;;  %558 = vmatpush1.msra.mxu0 %v3062_v2 }
  0x5b   :  { %2351 = vmatprep.subr.mxu1 %v3993_v0  ;;  %559 = vmatprep.subr.mxu0 %v3064_v3 }
  0x5c   :  { %2352 = vmatpush3.msra.mxu1 %v3175_v58  ;;  %560 = vmatpush1.msra.mxu0 %v3067_v4 }
  0x5d   :  { %2353 = vmatprep.subr.mxu1 %v3993_v0  ;;  %561 = vmatprep.subr.mxu0 %v3071_v6 }
  0x5e   :  { %2354 = vmatpush3.msra.mxu1 %v3181_v59  ;;  %562 = vmatpush1.msra.mxu0 %v3075_v9 }
  0x5f   :  { %2355 = vmatprep.subr.mxu1 %v3993_v0  ;;  %563 = vmatprep.subr.mxu0 %v3078_v11 }
  0x60   :  { %2356 = vmatpush3.msra.mxu1 %v3187_v60  ;;  %564 = vmatpush1.msra.mxu0 %v3081_v14 }
  0x61   :  { %2357 = vmatprep.subr.mxu1 %v3993_v0  ;;  %565 = vmatprep.subr.mxu0 %v3084_v16 }
  0x62   :  { %2358 = vmatpush3.msra.mxu1 %v3193_v61  ;;  %566 = vmatpush1.msra.mxu0 %v3087_v18 }
  0x63   :  { %2359 = vmatprep.subr.mxu1 %v3993_v0  ;;  %567 = vmatprep.subr.mxu0 %v3090_v20 }
  0x64   :  { %2360 = vmatpush3.msra.mxu1 %v3199_v62  ;;  %568 = vmatpush1.msra.mxu0 %v3093_v22 }
  0x65   :  { %2361 = vmatprep.subr.mxu1 %v3993_v0  ;;  %569 = vmatprep.subr.mxu0 %v3096_v24 }
  0x66   :  { %2362 = vmatpush3.msra.mxu1 %v3205_v63  ;;  %570 = vmatpush1.msra.mxu0 %v3099_v26 }
  0x67   :  { %2363 = vmatprep.subr.mxu1 %v3993_v0  ;;  %571 = vmatprep.subr.mxu0 %v3102_v28 }
  0x68   :  { %2364 = vmatpush3.msra.mxu1 %v3211_v5  ;;  %572 = vmatpush1.msra.mxu0 %v3105_v30 }
  0x69   :  { %2365 = vmatprep.subr.mxu1 %v3993_v0  ;;  %573 = vmatprep.subr.mxu0 %v3108_v32 }
  0x6a   :  { %2366 = vmatpush3.msra.mxu1 %v3217_v7  ;;  %574 = vmatpush1.msra.mxu0 %v3111_v34 }
  0x6b   :  { %2367 = vmatprep.subr.mxu1 %v3993_v0  ;;  %575 = vmatprep.subr.mxu0 %v3115_v35 }
  0x6c   :  { %2368 = vmatpush3.msra.mxu1 %v3223_v8  ;;  %576 = vmatpush1.msra.mxu0 %v3119_v37 }
  0x6d   :  { %2369 = vmatprep.subr.mxu1 %v3993_v0  ;;  %577 = vmatprep.subr.mxu0 %v3123_v38 }
  0x6e   :  { %2370 = vmatpush3.msra.mxu1 %v3229_v10  ;;  %578 = vmatpush1.msra.mxu0 %v3126_v40 }
  0x6f   :  { %2371 = vmatprep.subr.mxu1 %v3993_v0  ;;  %579 = vmatprep.subr.mxu0 %v3129_v41 }
  0x70   :  { %2372 = vmatpush3.msra.mxu1 %v3235_v12  ;;  %580 = vmatpush1.msra.mxu0 %v3132_v43 }
  0x71   :  { %2373 = vmatprep.subr.mxu1 %v3993_v0  ;;  %581 = vmatprep.subr.mxu0 %v3135_v44 }
  0x72   :  { %2374 = vmatpush3.msra.mxu1 %v3241_v13  ;;  %582 = vmatpush1.msra.mxu0 %v3138_v46 }
  0x73   :  { %2375 = vmatprep.subr.mxu1 %v3993_v0  ;;  %583 = vmatprep.subr.mxu0 %v3141_v47 }
  0x74   :  { %2376 = vmatpush3.msra.mxu1 %v3247_v15  ;;  %584 = vmatpush1.msra.mxu0 %v3144_v48 }
  0x75   :  { %2377 = vmatprep.subr.mxu1 %v3993_v0  ;;  %585 = vmatprep.subr.mxu0 %v3147_v50 }
  0x76   :  { %2378 = vmatpush3.msra.mxu1 %v3253_v17  ;;  %586 = vmatpush1.msra.mxu0 %v3151_v52 }
  0x77   :  { %2380 = vmatmul.mubr.f32.vlgmr.msra.gmra.mxu1 %v3993_v0  ;;  %2382 = vmatprep.subr.mxu1 %v3993_v0 }
  0x78   :  { %2383 = vmatpush3.msra.mxu1 %v3163_v56  ;;  %587 = vmatprep.subr.mxu0 %v3154_v54 }
  0x79   :  { %2384 = vmatprep.subr.mxu1 %v3993_v0  ;;  %588 = vmatpush1.msra.mxu0 %v3158_v55 }
  0x7a   :  { %2385 = vmatpush3.msra.mxu1 %v3169_v57  ;;  %621 = vmatprep.mubr.f32.mxu0 %v3993_v0 }
  0x7b   :  { %2386 = vmatprep.subr.mxu1 %v3993_v0  ;;  %2414 = vmatprep.mubr.msk.f32.mxu1 %vm2998_vm2, %v3993_v0 }
  0x7c   :  { %2387 = vmatpush3.msra.mxu1 %v3175_v58  ;;  %760 = vmatprep.subr.mxu0 %v3060_v1 }
  0x7d   :  { %2388 = vmatprep.subr.mxu1 %v3993_v0 }
  0x7e   :  { %2389 = vmatpush3.msra.mxu1 %v3181_v59 }
  0x7f   :  { %2390 = vmatprep.subr.mxu1 %v3993_v0 }
  0x80   :  { %2391 = vmatpush3.msra.mxu1 %v3187_v60 }
  0x81   :  { %2392 = vmatprep.subr.mxu1 %v3993_v0 }
  0x82   :  { %2393 = vmatpush3.msra.mxu1 %v3193_v61 }
  0x83   :  { %2394 = vmatprep.subr.mxu1 %v3993_v0 }
  0x84   :  { %2395 = vmatpush3.msra.mxu1 %v3199_v62 }
  0x85   :  { %2396 = vmatprep.subr.mxu1 %v3993_v0 }
  0x86   :  { %2397 = vmatpush3.msra.mxu1 %v3205_v63 }
  0x87   :  { %2398 = vmatprep.subr.mxu1 %v3993_v0 }
  0x88   :  { %2399 = vmatpush3.msra.mxu1 %v3211_v5 }
  0x89   :  { %2400 = vmatprep.subr.mxu1 %v3993_v0 }
  0x8a   :  { %2401 = vmatpush3.msra.mxu1 %v3217_v7 }
  0x8b   :  { %2402 = vmatprep.subr.mxu1 %v3993_v0 }
  0x8c   :  { %2403 = vmatpush3.msra.mxu1 %v3223_v8 }
  0x8d   :  { %2404 = vmatprep.subr.mxu1 %v3993_v0 }
  0x8e   :  { %2405 = vmatpush3.msra.mxu1 %v3229_v10 }
  0x8f   :  { %2406 = vmatprep.subr.mxu1 %v3993_v0 }
  0x90   :  { %2407 = vmatpush3.msra.mxu1 %v3235_v12 }
  0x91   :  { %2408 = vmatprep.subr.mxu1 %v3993_v0 }
  0x92   :  { %2409 = vmatpush3.msra.mxu1 %v3241_v13 }
  0x93   :  { %2410 = vmatprep.subr.mxu1 %v3993_v0 }
  0x94   :  { %2411 = vmatpush3.msra.mxu1 %v3247_v15 }
  0x95   :  { %2412 = vmatprep.subr.mxu1 %v3993_v0 }
  0x96   :  { %2413 = vmatpush3.msra.mxu1 %v3253_v17 }
  0x97   :  { %2417 = vmatprep.subr.mxu1 %v3993_v0 }
 0x106   :  { %v205_v29 = vpop.f32.mrf.mxu1 }
 0x107   :  { %v3312_v49 = vadd.f32 %v205_v29, %v110_v31 }
 0x108   :  { %v207_v42 = vpop.f32.mrf.mxu1 }
 0x109   :  { %4062 = vst [vmem:[#allocation27_spill] sm:$0xff] %v3312_v49  ;;  %v3320_v13 = vadd.f32 %v207_v42, %v114_v23 }
 0x10b   :  { %4064 = vst [vmem:[#allocation29_spill] sm:$0xff] %v3320_v13 }
 0x112   :  { %v211_v53 = vpop.f32.mrf.mxu1 }
 0x113   :  { %v3315_v0 = vadd.f32 %v211_v53, %v110_v31 }
 0x114   :  { %v213_v52 = vpop.f32.mrf.mxu1 }
 0x115   :  { %4063 = vst [vmem:[#allocation28_spill] sm:$0xff] %v3315_v0 }
 0x116   :  { %v422_v45 = vpop.f32.mrf.mxu0 }
 0x117   :  { %v423_v51 = vadd.f32 %v422_v45, %v3308_v33  ;;  %v3322_v45 = vadd.f32 %v213_v52, %v114_v23 }
 0x118   :  { %v424_v19 = vpop.f32.mrf.mxu0 }
 0x119   :  { %v498_v1 = vrot.slane %v423_v51, 1  ;;  %v501_v17 = vadd.f32 %v423_v51, %v3312_v49  ;;  %v425_v55 = vadd.f32 %v424_v19, %v3310_v39  ;;  %4065 = vst [vmem:[#allocation30_spill] sm:$0xff] %v3322_v45 }
 0x11b   :  { %v502_v54 = vadd.f32 %v498_v1, %v3315_v0  ;;  %v2135_v15 = vmul.f32 -1.442695, %v501_v17  ;;  %v516_v29 = vrot.slane %v425_v55, 1  ;;  %v519_v31 = vadd.f32 %v425_v55, %v3320_v13 }
 0x11d   :  { %2673 = vpow2.f32 %v2135_v15  ;;  %v2136_v50 = vmul.f32 -1.442695, %v502_v54  ;;  %v520_v53 = vadd.f32 %v516_v29, %v3322_v45  ;;  %v2137_v51 = vmul.f32 -1.442695, %v519_v31  ;;  %v2346_v54 = vpop.f32.mrf.mxu1 }
 0x11e   :  { %v117_v15 = vsub.s32 2, %v108_v21 }
 0x11f   :  { %2675 = vpow2.f32 %v2136_v50  ;;  %v2138_v49 = vmul.f32 -1.442695, %v520_v53  ;;  %v282_v50 = vpop.f32.mrf.mxu1 }
 0x120   :  { %2677 = vpow2.f32 %v2137_v51  ;;  %v3326_v42 = vrot.slane %v339_v27, %v117_v15  ;;  %v118_v55 = vrot.slane %v105_v25, %v117_v15 }
 0x121   :  { %2679 = vpow2.f32 %v2138_v49 }
 0x122   :  { %4066 = vst [vmem:[#allocation31_spill] sm:$0xff] %v3326_v42  ;;  %v3329_v45 = vadd.f32 %v282_v50, %v118_v55  ;;  %v3331_v21 = vadd.f32 %v2346_v54, %v118_v55 }
 0x12a   :  { %v2674_v36 = vpop.eup %2673 }
 0x12b   :  { %v509_v1 = vadd.f32 1.0, %v2674_v36 }
 0x12c   :  { %v2676_v17 = vpop.eup %2675 }
 0x12d   :  { %v510_v19 = vadd.f32 1.0, %v2676_v17  ;;  %2681 = vrcp.f32 %v509_v1  ;;  %v2678_v52 = vpop.eup %2677 }
 0x12e   :  { %v2680_v23 = vpop.eup %2679  ;;  %v527_v29 = vadd.f32 1.0, %v2678_v52 }
 0x12f   :  { %2683 = vrcp.f32 %v510_v19  ;;  %v528_v53 = vadd.f32 1.0, %v2680_v23 }
 0x130   :  { %2685 = vrcp.f32 %v527_v29 }
 0x131   :  { %2687 = vrcp.f32 %v528_v53 }
 0x137   :  { %v493_v13 = vpop.f32.mrf.mxu1 }
 0x138   :  { %v494_v31 = vadd.f32 %v493_v13, %v3326_v42 }
 0x139   :  { %v2381_v49 = vpop.f32.mrf.mxu1 }
 0x13a   :  { %v2682_v51 = vpop.eup %2681  ;;  %v534_v36 = vrot.slane %v494_v31, 1 }
 0x13b   :  { %v537_v1 = vmul.f32 %v2682_v51, %v494_v31 }
 0x13c   :  { %v2684_v17 = vpop.eup %2683 }
 0x13d   :  { %v538_v27 = vmul.f32 %v2684_v17, %v534_v36  ;;  %v539_v19 = vadd.f32 %v537_v1, %v3329_v45  ;;  %v2686_v13 = vpop.eup %2685  ;;  %v4067_v1 = vmov 0.0   ;;  %v4069_v17 = vld [vmem:[#allocation18_spill] sm:$0xff] }
 0x13e   :  { %v2688_v15 = vpop.eup %2687  ;;  %v543_v23 = vsub.f32 1.0, %v2686_v13  ;;  %v547_v29 = vmul.f32 0.0, %v2686_v13  ;;  %v4073_v13 = vld [vmem:[#allocation21_spill] sm:$0xff] }
 0x13f   :  { %v540_v25 = vadd.f32 %v538_v27, %v3331_v21  ;;  %2689 = vtanh.f32 %v539_v19  ;;  %v544_v49 = vsub.f32 1.0, %v2688_v15  ;;  %v548_v51 = vmul.f32 0.0, %v2688_v15  ;;  %v4070_v27 = vld [vmem:[#allocation19_spill] sm:$0xff]  ;;  %v4074_v15 = vld [vmem:[#allocation24_spill] sm:$0xff] }
 0x140   :  { %v4071_v19 = vld [vmem:[#allocation23_spill] sm:$0xff] }
 0x141   :  { %2691 = vtanh.f32 %v540_v25  ;;  %v4072_v25 = vld [vmem:[#allocation20_spill] sm:$0xff] }
 0x14c   :  { %v2690_v52 = vpop.eup %2689 }
 0x14d   :  { %v545_v42 = vmul.f32 %v2690_v52, %v543_v23  ;;  %v4075_v52 = vld [vmem:[#allocation15_spill] sm:$0xff] }
 0x14e   :  { %v2692_v50 = vpop.eup %2691 }
 0x14f   :  { %v546_v31 = vmul.f32 %v2692_v50, %v544_v49  ;;  %v3337_v55 = vadd.f32 %v547_v29, %v545_v42  ;;  %v4068_v42 = vld [vmem:[#allocation22_spill] sm:$0xff] }
 0x151   :  { %v3335_v54 = vadd.f32 %v548_v51, %v546_v31 }
 0x153   :  { %v4018_v53 = vrot.slane %v3335_v54, 7 }
 0x155   :  { %v555_v36 = vsel %vm554_vm3, %v4018_v53, %v3337_v55 }
 0x156   :  { %622 = vmatmul.mubr.f32.vlgmr.msra.gmra.mxu0 %v555_v36  ;;  %2415 = vmatmul.mubr.f32.vlgmr.msra.gmra.mxu1 %v555_v36 }
 0x157   :  { %761 = vmatpush1.msra.mxu0 %v3062_v2  ;;  %2418 = vmatpush3.msra.mxu1 %v3163_v56 }
 0x158   :  { %762 = vmatprep.subr.mxu0 %v3064_v3  ;;  %2419 = vmatprep.subr.mxu1 %v4067_v1 }
 0x159   :  { %763 = vmatpush1.msra.mxu0 %v3067_v4  ;;  %2420 = vmatpush3.msra.mxu1 %v3169_v57 }
 0x15a   :  { %764 = vmatprep.subr.mxu0 %v3071_v6  ;;  %2421 = vmatprep.subr.mxu1 %v4067_v1 }
 0x15b   :  { %765 = vmatpush1.msra.mxu0 %v3075_v9  ;;  %2422 = vmatpush3.msra.mxu1 %v3175_v58 }
 0x15c   :  { %766 = vmatprep.subr.mxu0 %v3078_v11  ;;  %2423 = vmatprep.subr.mxu1 %v4067_v1 }
 0x15d   :  { %767 = vmatpush1.msra.mxu0 %v3081_v14  ;;  %2424 = vmatpush3.msra.mxu1 %v3181_v59 }
 0x15e   :  { %768 = vmatprep.subr.mxu0 %v3084_v16  ;;  %2425 = vmatprep.subr.mxu1 %v4067_v1 }
 0x15f   :  { %769 = vmatpush1.msra.mxu0 %v3087_v18  ;;  %2426 = vmatpush3.msra.mxu1 %v3187_v60 }
 0x160   :  { %770 = vmatprep.subr.mxu0 %v3090_v20  ;;  %2427 = vmatprep.subr.mxu1 %v4067_v1 }
 0x161   :  { %771 = vmatpush1.msra.mxu0 %v3093_v22  ;;  %2428 = vmatpush3.msra.mxu1 %v3193_v61 }
 0x162   :  { %772 = vmatprep.subr.mxu0 %v3096_v24  ;;  %2429 = vmatprep.subr.mxu1 %v4067_v1 }
 0x163   :  { %773 = vmatpush1.msra.mxu0 %v3099_v26  ;;  %2430 = vmatpush3.msra.mxu1 %v3199_v62 }
 0x164   :  { %774 = vmatprep.subr.mxu0 %v3102_v28  ;;  %2431 = vmatprep.subr.mxu1 %v4067_v1 }
 0x165   :  { %775 = vmatpush1.msra.mxu0 %v3105_v30  ;;  %2432 = vmatpush3.msra.mxu1 %v3205_v63 }
 0x166   :  { %776 = vmatprep.subr.mxu0 %v3108_v32  ;;  %2433 = vmatprep.subr.mxu1 %v4067_v1 }
 0x167   :  { %777 = vmatpush1.msra.mxu0 %v3111_v34  ;;  %2434 = vmatpush3.msra.mxu1 %v3211_v5 }
 0x168   :  { %778 = vmatprep.subr.mxu0 %v3115_v35  ;;  %2435 = vmatprep.subr.mxu1 %v4067_v1 }
 0x169   :  { %779 = vmatpush1.msra.mxu0 %v3119_v37  ;;  %2436 = vmatpush3.msra.mxu1 %v3217_v7 }
 0x16a   :  { %780 = vmatprep.subr.mxu0 %v3123_v38  ;;  %2437 = vmatprep.subr.mxu1 %v4067_v1 }
 0x16b   :  { %781 = vmatpush1.msra.mxu0 %v3126_v40  ;;  %2438 = vmatpush3.msra.mxu1 %v3223_v8 }
 0x16c   :  { %782 = vmatprep.subr.mxu0 %v3129_v41  ;;  %2439 = vmatprep.subr.mxu1 %v4067_v1 }
 0x16d   :  { %783 = vmatpush1.msra.mxu0 %v3132_v43  ;;  %2440 = vmatpush3.msra.mxu1 %v3229_v10 }
 0x16e   :  { %784 = vmatprep.subr.mxu0 %v3135_v44  ;;  %2441 = vmatprep.subr.mxu1 %v4067_v1 }
 0x16f   :  { %785 = vmatpush1.msra.mxu0 %v3138_v46  ;;  %2442 = vmatpush3.msra.mxu1 %v3235_v12 }
 0x170   :  { %786 = vmatprep.subr.mxu0 %v3141_v47  ;;  %2443 = vmatprep.subr.mxu1 %v4067_v1 }
 0x171   :  { %787 = vmatpush1.msra.mxu0 %v3144_v48  ;;  %2444 = vmatpush3.msra.mxu1 %v4068_v42  ;;  %v4078_v42 = vld [vmem:[#allocation29_spill] sm:$0xff] }
 0x172   :  { %788 = vmatprep.subr.mxu0 %v4069_v17  ;;  %2445 = vmatprep.subr.mxu1 %v4067_v1 }
 0x173   :  { %789 = vmatpush1.msra.mxu0 %v4070_v27  ;;  %2446 = vmatpush3.msra.mxu1 %v4071_v19 }
 0x174   :  { %790 = vmatprep.subr.mxu0 %v4072_v25  ;;  %2447 = vmatprep.subr.mxu1 %v4067_v1 }
 0x175   :  { %791 = vmatpush1.msra.mxu0 %v4073_v13  ;;  %824 = vmatprep.mubr.f32.mxu0 %v4067_v1  ;;  %v4076_v13 = vld [vmem:[#allocation27_spill] sm:$0xff] }
 0x176   :  { %2448 = vmatpush3.msra.mxu1 %v4074_v15  ;;  %2449 = vmatprep.mubr.msk.f32.mxu1 %vm2998_vm2, %v4067_v1 }
 0x177   :  { %968 = vmatprep.subr.mxu0 %v4075_v52  ;;  %2452 = vmatprep.subr.mxu1 %v4067_v1  ;;  %v4077_v52 = vld [vmem:[#allocation30_spill] sm:$0xff] }
 0x216   :  { %v623_v23 = vpop.f32.mrf.mxu0  ;;  %v694_v49 = vpop.f32.mrf.mxu1 }
 0x217   :  { %v624_v50 = vadd.f32 %v623_v23, %v3308_v33 }
 0x218   :  { %v625_v31 = vpop.f32.mrf.mxu0  ;;  %v2416_v51 = vpop.f32.mrf.mxu1 }
 0x219   :  { %v699_v29 = vrot.slane %v624_v50, 7  ;;  %v703_v36 = vadd.f32 %v624_v50, %v3315_v0  ;;  %v626_v53 = vadd.f32 %v625_v31, %v3310_v39 }
 0x21b   :  { %v702_v15 = vadd.f32 %v699_v29, %v4076_v13  ;;  %v2140_v25 = vmul.f32 -1.442695, %v703_v36  ;;  %v717_v27 = vrot.slane %v626_v53, 7  ;;  %v721_v17 = vadd.f32 %v626_v53, %v4077_v52 }
 0x21d   :  { %v2139_v19 = vmul.f32 -1.442695, %v702_v15  ;;  %2693 = vpow2.f32 %v2140_v25  ;;  %v720_v48 = vadd.f32 %v717_v27, %v4078_v42  ;;  %v2142_v47 = vmul.f32 -1.442695, %v721_v17  ;;  %v4079_v15 = vld [vmem:[#allocation31_spill] sm:$0xff] }
 0x21e   :  { %v695_v25 = vadd.f32 %v694_v49, %v4079_v15  ;;  %v748_v49 = vrot.slane %v3337_v55, 7 }
 0x21f   :  { %2695 = vpow2.f32 %v2139_v19  ;;  %v2141_v23 = vmul.f32 -1.442695, %v720_v48 }
 0x220   :  { %2697 = vpow2.f32 %v2142_v47  ;;  %v735_v53 = vrot.slane %v695_v25, 7 }
 0x221   :  { %2699 = vpow2.f32 %v2141_v23 }
 0x22a   :  { %v2694_v51 = vpop.eup %2693 }
 0x22b   :  { %v711_v33 = vadd.f32 1.0, %v2694_v51 }
 0x22c   :  { %v2696_v50 = vpop.eup %2695 }
 0x22d   :  { %v710_v0 = vadd.f32 1.0, %v2696_v50  ;;  %2701 = vrcp.f32 %v711_v33  ;;  %v2698_v31 = vpop.eup %2697 }
 0x22e   :  { %v2700_v29 = vpop.eup %2699  ;;  %v729_v36 = vadd.f32 1.0, %v2698_v31 }
 0x22f   :  { %2703 = vrcp.f32 %v710_v0  ;;  %v728_v19 = vadd.f32 1.0, %v2700_v29 }
 0x230   :  { %2705 = vrcp.f32 %v729_v36  ;;  %v4080_v36 = vrot.slane %v3335_v54, 7 }
 0x231   :  { %2707 = vrcp.f32 %v728_v19 }
 0x23a   :  { %v2702_v13 = vpop.eup %2701 }
 0x23b   :  { %v739_v52 = vmul.f32 %v2702_v13, %v695_v25 }
 0x23c   :  { %v2704_v27 = vpop.eup %2703 }
 0x23d   :  { %v738_v48 = vmul.f32 %v2704_v27, %v735_v53  ;;  %v741_v47 = vadd.f32 %v739_v52, %v3331_v21  ;;  %v2706_v0 = vpop.eup %2705 }
 0x23e   :  { %v2708_v33 = vpop.eup %2707  ;;  %v745_v50 = vsub.f32 1.0, %v2706_v0  ;;  %v752_v53 = vmul.f32 %v2706_v0, %v4080_v36 }
 0x23f   :  { %v740_v17 = vadd.f32 %v738_v48, %v3329_v45  ;;  %2709 = vtanh.f32 %v741_v47  ;;  %v744_v51 = vsub.f32 1.0, %v2708_v33  ;;  %v751_v25 = vmul.f32 %v2708_v33, %v748_v49 }
 0x241   :  { %2711 = vtanh.f32 %v740_v17  ;;  %v4094_v17 = vld [vmem:[#allocation30_spill] sm:$0xff] }
 0x24c   :  { %v2710_v23 = vpop.eup %2709 }
 0x24d   :  { %v747_v13 = vmul.f32 %v2710_v23, %v745_v50 }
 0x24e   :  { %v2712_v31 = vpop.eup %2711 }
 0x24f   :  { %v746_v29 = vmul.f32 %v2712_v31, %v744_v51  ;;  %v3425_v19 = vadd.f32 %v752_v53, %v747_v13 }
 0x251   :  { %v3423_v52 = vadd.f32 %v751_v25, %v746_v29 }
 0x253   :  { %v757_v27 = vrot.slane %v3423_v52, 1 }
 0x255   :  { %v758_v48 = vsel %vm554_vm3, %v3425_v19, %v757_v27 }
 0x256   :  { %825 = vmatmul.mubr.f32.vlgmr.msra.gmra.mxu0 %v758_v48  ;;  %2450 = vmatmul.mubr.f32.vlgmr.msra.gmra.mxu1 %v758_v48 }
 0x257   :  { %969 = vmatpush1.msra.mxu0 %v3062_v2  ;;  %2453 = vmatpush3.msra.mxu1 %v3163_v56  ;;  %v4081_v2 = vld [vmem:[#allocation16_spill] sm:$0xff] }
 0x258   :  { %970 = vmatprep.subr.mxu0 %v3064_v3  ;;  %2454 = vmatprep.subr.mxu1 %v4067_v1  ;;  %v4082_v3 = vld [vmem:[#allocation17_spill] sm:$0xff] }
 0x259   :  { %971 = vmatpush1.msra.mxu0 %v3067_v4  ;;  %2455 = vmatpush3.msra.mxu1 %v3169_v57  ;;  %v4083_v4 = vld [vmem:[#allocation22_spill] sm:$0xff] }
 0x25a   :  { %972 = vmatprep.subr.mxu0 %v3071_v6  ;;  %2456 = vmatprep.subr.mxu1 %v4067_v1  ;;  %v4084_v6 = vld [vmem:[#allocation18_spill] sm:$0xff] }
 0x25b   :  { %973 = vmatpush1.msra.mxu0 %v3075_v9  ;;  %2457 = vmatpush3.msra.mxu1 %v3175_v58  ;;  %v4085_v9 = vld [vmem:[#allocation19_spill] sm:$0xff] }
 0x25c   :  { %974 = vmatprep.subr.mxu0 %v3078_v11  ;;  %2458 = vmatprep.subr.mxu1 %v4067_v1  ;;  %v4086_v11 = vld [vmem:[#allocation23_spill] sm:$0xff] }
 0x25d   :  { %975 = vmatpush1.msra.mxu0 %v3081_v14  ;;  %2459 = vmatpush3.msra.mxu1 %v3181_v59  ;;  %v4087_v14 = vld [vmem:[#allocation20_spill] sm:$0xff] }
 0x25e   :  { %976 = vmatprep.subr.mxu0 %v3084_v16  ;;  %2460 = vmatprep.subr.mxu1 %v4067_v1  ;;  %v4088_v16 = vld [vmem:[#allocation21_spill] sm:$0xff] }
 0x25f   :  { %977 = vmatpush1.msra.mxu0 %v3087_v18  ;;  %2461 = vmatpush3.msra.mxu1 %v3187_v60  ;;  %v4089_v18 = vld [vmem:[#allocation24_spill] sm:$0xff] }
 0x260   :  { %978 = vmatprep.subr.mxu0 %v3090_v20  ;;  %2462 = vmatprep.subr.mxu1 %v4067_v1  ;;  %v3495_v20 = vld [vmem:[#allocation7 + $0x170] sm:$0xff] }
 0x261   :  { %979 = vmatpush1.msra.mxu0 %v3093_v22  ;;  %2463 = vmatpush3.msra.mxu1 %v3193_v61  ;;  %4090 = vst [vmem:[#allocation15_spill] sm:$0xff] %v3495_v20 }
 0x262   :  { %980 = vmatprep.subr.mxu0 %v3096_v24  ;;  %2464 = vmatprep.subr.mxu1 %v4067_v1 }
 0x263   :  { %981 = vmatpush1.msra.mxu0 %v3099_v26  ;;  %2465 = vmatpush3.msra.mxu1 %v3199_v62  ;;  %v4091_v26 = vld [vmem:[#allocation25_spill] sm:$0xff] }
 0x264   :  { %982 = vmatprep.subr.mxu0 %v3102_v28  ;;  %2466 = vmatprep.subr.mxu1 %v4067_v1 }
 0x265   :  { %983 = vmatpush1.msra.mxu0 %v3105_v30  ;;  %2467 = vmatpush3.msra.mxu1 %v3205_v63 }
 0x266   :  { %984 = vmatprep.subr.mxu0 %v3108_v32  ;;  %2468 = vmatprep.subr.mxu1 %v4067_v1 }
 0x267   :  { %985 = vmatpush1.msra.mxu0 %v3111_v34  ;;  %2469 = vmatpush3.msra.mxu1 %v3211_v5 }
 0x268   :  { %986 = vmatprep.subr.mxu0 %v3115_v35  ;;  %2470 = vmatprep.subr.mxu1 %v4067_v1 }
 0x269   :  { %987 = vmatpush1.msra.mxu0 %v3119_v37  ;;  %2471 = vmatpush3.msra.mxu1 %v3217_v7 }
 0x26a   :  { %988 = vmatprep.subr.mxu0 %v3123_v38  ;;  %2472 = vmatprep.subr.mxu1 %v4067_v1  ;;  %v4092_v38 = vld [vmem:[#allocation27_spill] sm:$0xff] }
 0x26b   :  { %989 = vmatpush1.msra.mxu0 %v3126_v40  ;;  %2473 = vmatpush3.msra.mxu1 %v3223_v8 }
 0x26c   :  { %990 = vmatprep.subr.mxu0 %v3129_v41  ;;  %2474 = vmatprep.subr.mxu1 %v4067_v1  ;;  %v4093_v41 = vld [vmem:[#allocation28_spill] sm:$0xff] }
 0x26d   :  { %991 = vmatpush1.msra.mxu0 %v3132_v43  ;;  %2475 = vmatpush3.msra.mxu1 %v3229_v10 }
 0x26e   :  { %992 = vmatprep.subr.mxu0 %v3135_v44  ;;  %2476 = vmatprep.subr.mxu1 %v4067_v1 }
 0x26f   :  { %993 = vmatpush1.msra.mxu0 %v3138_v46  ;;  %2477 = vmatpush3.msra.mxu1 %v3235_v12 }
 0x270   :  { %994 = vmatprep.subr.mxu0 %v4081_v2  ;;  %2478 = vmatprep.subr.mxu1 %v4067_v1 }
 0x271   :  { %995 = vmatpush1.msra.mxu0 %v4082_v3  ;;  %2479 = vmatpush3.msra.mxu1 %v4083_v4 }
 0x272   :  { %996 = vmatprep.subr.mxu0 %v4084_v6  ;;  %2480 = vmatprep.subr.mxu1 %v4067_v1 }
 0x273   :  { %997 = vmatpush1.msra.mxu0 %v4085_v9  ;;  %2481 = vmatpush3.msra.mxu1 %v4086_v11 }
 0x274   :  { %998 = vmatprep.subr.mxu0 %v4087_v14  ;;  %2482 = vmatprep.subr.mxu1 %v4067_v1 }
 0x275   :  { %999 = vmatpush1.msra.mxu0 %v4088_v16  ;;  %1032 = vmatprep.mubr.f32.mxu0 %v4067_v1 }
 0x276   :  { %2483 = vmatpush3.msra.mxu1 %v4089_v18  ;;  %2484 = vmatprep.mubr.msk.f32.mxu1 %vm2998_vm2, %v4067_v1 }
 0x277   :  { %1176 = vmatprep.subr.mxu0 %v3495_v20  ;;  %2487 = vmatprep.subr.mxu1 %v4067_v1 }
 0x316   :  { %v826_v22 = vpop.f32.mrf.mxu0  ;;  %v897_v24 = vpop.f32.mrf.mxu1 }
 0x317   :  { %v827_v28 = vadd.f32 %v826_v22, %v4091_v26  ;;  %v898_v25 = vadd.f32 %v897_v24, %v4079_v15  ;;  %v954_v24 = vrot.slane %v3423_v52, 7 }
 0x318   :  { %v828_v30 = vpop.f32.mrf.mxu0  ;;  %v2451_v32 = vpop.f32.mrf.mxu1 }
 0x319   :  { %v902_v34 = vrot.slane %v827_v28, 6  ;;  %v903_v35 = vrot.slane %v827_v28, 7  ;;  %v829_v37 = vadd.f32 %v828_v30, %v3310_v39  ;;  %v940_v27 = vrot.slane %v898_v25, 6 }
 0x31a   :  { %v941_v2 = vrot.slane %v898_v25, 7  ;;  %v3573_v25 = vld [vmem:[#allocation7 + $0xc0] sm:$0xff] }
 0x31b   :  { %v906_v40 = vadd.f32 %v902_v34, %v4092_v38  ;;  %v907_v43 = vadd.f32 %v903_v35, %v4093_v41  ;;  %v921_v54 = vrot.slane %v829_v37, 6  ;;  %v922_v55 = vrot.slane %v829_v37, 7 }
 0x31c   :  { %v955_v34 = vrot.slane %v3425_v19, 7  ;;  %v3521_v19 = vld [vmem:[#allocation7 + $0x158] sm:$0xff] }
 0x31d   :  { %v2143_v44 = vmul.f32 -1.442695, %v906_v40  ;;  %v2144_v46 = vmul.f32 -1.442695, %v907_v43  ;;  %v925_v47 = vadd.f32 %v921_v54, %v4078_v42  ;;  %v926_v0 = vadd.f32 %v922_v55, %v4094_v17 }
 0x31f   :  { %2713 = vpow2.f32 %v2143_v44  ;;  %v2145_v33 = vmul.f32 -1.442695, %v925_v47  ;;  %v2146_v23 = vmul.f32 -1.442695, %v926_v0 }
 0x320   :  { %2715 = vpow2.f32 %v2144_v46 }
 0x321   :  { %2717 = vpow2.f32 %v2145_v33  ;;  %v3517_v33 = vld [vmem:[#allocation7 + $0x168] sm:$0xff] }
 0x322   :  { %2719 = vpow2.f32 %v2146_v23  ;;  %v3525_v23 = vld [vmem:[#allocation7 + $0x150] sm:$0xff] }
 0x32c   :  { %v2714_v49 = vpop.eup %2713 }
 0x32d   :  { %v2716_v51 = vpop.eup %2715  ;;  %v914_v50 = vadd.f32 1.0, %v2714_v49  ;;  %v3529_v49 = vld [vmem:[#allocation7 + $0x140] sm:$0xff] }
 0x32e   :  { %v915_v31 = vadd.f32 1.0, %v2716_v51  ;;  %v2718_v29 = vpop.eup %2717  ;;  %v3533_v51 = vld [vmem:[#allocation7 + $0x138] sm:$0xff] }
 0x32f   :  { %2721 = vrcp.f32 %v914_v50  ;;  %v2720_v13 = vpop.eup %2719  ;;  %v933_v36 = vadd.f32 1.0, %v2718_v29  ;;  %v3541_v50 = vld [vmem:[#allocation7 + $0x120] sm:$0xff]  ;;  %v3557_v29 = vld [vmem:[#allocation7 + $0xf0] sm:$0xff] }
 0x330   :  { %2723 = vrcp.f32 %v915_v31  ;;  %v934_v53 = vadd.f32 1.0, %v2720_v13  ;;  %v3549_v31 = vld [vmem:[#allocation7 + $0x108] sm:$0xff]  ;;  %v3565_v13 = vld [vmem:[#allocation7 + $0xd8] sm:$0xff] }
 0x331   :  { %2725 = vrcp.f32 %v933_v36  ;;  %v3581_v36 = vld [vmem:[#allocation7 + $0xa8] sm:$0xff] }
 0x332   :  { %2727 = vrcp.f32 %v934_v53  ;;  %v3589_v53 = vld [vmem:[#allocation7 + $0x90] sm:$0xff] }
 0x33c   :  { %v2722_v48 = vpop.eup %2721 }
 0x33d   :  { %v2724_v3 = vpop.eup %2723  ;;  %v944_v6 = vmul.f32 %v2722_v48, %v940_v27  ;;  %v3597_v27 = vld [vmem:[#allocation7 + $0x78] sm:$0xff]  ;;  %v3605_v48 = vld [vmem:[#allocation7 + $0x60] sm:$0xff] }
 0x33e   :  { %v945_v9 = vmul.f32 %v2724_v3, %v941_v2  ;;  %v2726_v22 = vpop.eup %2725  ;;  %v3613_v2 = vld [vmem:[#allocation7 + $0x48] sm:$0xff]  ;;  %v3621_v3 = vld [vmem:[#allocation7 + $0x30] sm:$0xff] }
 0x33f   :  { %v946_v14 = vadd.f32 %v944_v6, %v3329_v45  ;;  %v2728_v28 = vpop.eup %2727  ;;  %v950_v30 = vsub.f32 1.0, %v2726_v22  ;;  %v958_v43 = vmul.f32 %v2726_v22, %v954_v24  ;;  %4096 = vst [vmem:[#allocation16_spill] sm:$0xff] %v3621_v3  ;;  %v3629_v6 = vld [vmem:[#allocation7 + $0x18] sm:$0xff] }
 0x340   :  { %v947_v16 = vadd.f32 %v945_v9, %v3331_v21  ;;  %v951_v35 = vsub.f32 1.0, %v2728_v28  ;;  %v959_v46 = vmul.f32 %v2728_v28, %v955_v34  ;;  %4098 = vst [vmem:[#allocation22_spill] sm:$0xff] %v3629_v6  ;;  %v3637_v9 = vld [vmem:[#allocation7] sm:$0xff] }
 0x341   :  { %2729 = vtanh.f32 %v946_v14  ;;  %4100 = vst [vmem:[#allocation19_spill] sm:$0xff] %v3637_v9 }
 0x342   :  { %2731 = vtanh.f32 %v947_v16 }
 0x34e   :  { %v2730_v32 = vpop.eup %2729 }
 0x34f   :  { %v2732_v37 = vpop.eup %2731  ;;  %v952_v40 = vmul.f32 %v2730_v32, %v950_v30 }
 0x350   :  { %v953_v44 = vmul.f32 %v2732_v37, %v951_v35 }
 0x351   :  { %v3510_v54 = vadd.f32 %v958_v43, %v952_v40 }
 0x352   :  { %v3512_v55 = vadd.f32 %v959_v46, %v953_v44 }
 0x353   :  { %v964_v47 = vrot.slane %v3510_v54, 2 }
 0x354   :  { %v965_v0 = vrot.slane %v3512_v55, 1 }
 0x356   :  { %v966_v52 = vsel %vm554_vm3, %v965_v0, %v964_v47 }
 0x357   :  { %1033 = vmatmul.mubr.f32.vlgmr.msra.gmra.mxu0 %v966_v52  ;;  %2485 = vmatmul.mubr.f32.vlgmr.msra.gmra.mxu1 %v966_v52 }
 0x358   :  { %1177 = vmatpush1.msra.mxu0 %v3517_v33  ;;  %2488 = vmatpush3.msra.mxu1 %v3163_v56  ;;  %v3537_v56 = vld [vmem:[#allocation7 + $0x128] sm:$0xff] }
 0x359   :  { %1178 = vmatprep.subr.mxu0 %v3521_v19  ;;  %2489 = vmatprep.subr.mxu1 %v4067_v1 }
 0x35a   :  { %1179 = vmatpush1.msra.mxu0 %v3525_v23  ;;  %2490 = vmatpush3.msra.mxu1 %v3169_v57  ;;  %v3545_v57 = vld [vmem:[#allocation7 + $0x110] sm:$0xff] }
 0x35b   :  { %1180 = vmatprep.subr.mxu0 %v3529_v49  ;;  %2491 = vmatprep.subr.mxu1 %v4067_v1 }
 0x35c   :  { %1181 = vmatpush1.msra.mxu0 %v3533_v51  ;;  %2492 = vmatpush3.msra.mxu1 %v3175_v58  ;;  %v3553_v58 = vld [vmem:[#allocation7 + $0xf8] sm:$0xff] }
 0x35d   :  { %1182 = vmatprep.subr.mxu0 %v3537_v56  ;;  %2493 = vmatprep.subr.mxu1 %v4067_v1 }
 0x35e   :  { %1183 = vmatpush1.msra.mxu0 %v3541_v50  ;;  %2494 = vmatpush3.msra.mxu1 %v3181_v59  ;;  %v3561_v59 = vld [vmem:[#allocation7 + $0xe0] sm:$0xff] }
 0x35f   :  { %1184 = vmatprep.subr.mxu0 %v3545_v57  ;;  %2495 = vmatprep.subr.mxu1 %v4067_v1 }
 0x360   :  { %1185 = vmatpush1.msra.mxu0 %v3549_v31  ;;  %2496 = vmatpush3.msra.mxu1 %v3187_v60  ;;  %v3569_v60 = vld [vmem:[#allocation7 + $0xc8] sm:$0xff] }
 0x361   :  { %1186 = vmatprep.subr.mxu0 %v3553_v58  ;;  %2497 = vmatprep.subr.mxu1 %v4067_v1 }
 0x362   :  { %1187 = vmatpush1.msra.mxu0 %v3557_v29  ;;  %2498 = vmatpush3.msra.mxu1 %v3193_v61  ;;  %v3577_v61 = vld [vmem:[#allocation7 + $0xb0] sm:$0xff] }
 0x363   :  { %1188 = vmatprep.subr.mxu0 %v3561_v59  ;;  %2499 = vmatprep.subr.mxu1 %v4067_v1 }
 0x364   :  { %1189 = vmatpush1.msra.mxu0 %v3565_v13  ;;  %2500 = vmatpush3.msra.mxu1 %v3199_v62  ;;  %v3585_v62 = vld [vmem:[#allocation7 + $0x98] sm:$0xff] }
 0x365   :  { %1190 = vmatprep.subr.mxu0 %v3569_v60  ;;  %2501 = vmatprep.subr.mxu1 %v4067_v1 }
 0x366   :  { %1191 = vmatpush1.msra.mxu0 %v3573_v25  ;;  %2502 = vmatpush3.msra.mxu1 %v3205_v63  ;;  %v3593_v63 = vld [vmem:[#allocation7 + $0x80] sm:$0xff] }
 0x367   :  { %1192 = vmatprep.subr.mxu0 %v3577_v61  ;;  %2503 = vmatprep.subr.mxu1 %v4067_v1 }
 0x368   :  { %1193 = vmatpush1.msra.mxu0 %v3581_v36  ;;  %2504 = vmatpush3.msra.mxu1 %v3211_v5  ;;  %v3601_v5 = vld [vmem:[#allocation7 + $0x68] sm:$0xff] }
 0x369   :  { %1194 = vmatprep.subr.mxu0 %v3585_v62  ;;  %2505 = vmatprep.subr.mxu1 %v4067_v1 }
 0x36a   :  { %1195 = vmatpush1.msra.mxu0 %v3589_v53  ;;  %2506 = vmatpush3.msra.mxu1 %v3217_v7  ;;  %v3609_v7 = vld [vmem:[#allocation7 + $0x50] sm:$0xff] }
 0x36b   :  { %1196 = vmatprep.subr.mxu0 %v3593_v63  ;;  %2507 = vmatprep.subr.mxu1 %v4067_v1 }
 0x36c   :  { %1197 = vmatpush1.msra.mxu0 %v3597_v27  ;;  %2508 = vmatpush3.msra.mxu1 %v3223_v8  ;;  %v3617_v8 = vld [vmem:[#allocation7 + $0x38] sm:$0xff] }
 0x36d   :  { %1198 = vmatprep.subr.mxu0 %v3601_v5  ;;  %2509 = vmatprep.subr.mxu1 %v4067_v1  ;;  %4095 = vst [vmem:[#allocation31_spill] sm:$0xff] %v3617_v8 }
 0x36e   :  { %1199 = vmatpush1.msra.mxu0 %v3605_v48  ;;  %2510 = vmatpush3.msra.mxu1 %v3229_v10  ;;  %v3625_v10 = vld [vmem:[#allocation7 + $0x20] sm:$0xff] }
 0x36f   :  { %1200 = vmatprep.subr.mxu0 %v3609_v7  ;;  %2511 = vmatprep.subr.mxu1 %v4067_v1  ;;  %4097 = vst [vmem:[#allocation17_spill] sm:$0xff] %v3625_v10 }
 0x370   :  { %1201 = vmatpush1.msra.mxu0 %v3613_v2  ;;  %2512 = vmatpush3.msra.mxu1 %v3235_v12  ;;  %v3633_v12 = vld [vmem:[#allocation7 + $0x8] sm:$0xff] }
 0x371   :  { %1202 = vmatprep.subr.mxu0 %v3617_v8  ;;  %2513 = vmatprep.subr.mxu1 %v4067_v1  ;;  %4099 = vst [vmem:[#allocation18_spill] sm:$0xff] %v3633_v12 }
 0x372   :  { %1203 = vmatpush1.msra.mxu0 %v3621_v3  ;;  %2514 = vmatpush3.msra.mxu1 %v4083_v4 }
 0x373   :  { %1204 = vmatprep.subr.mxu0 %v3625_v10  ;;  %2515 = vmatprep.subr.mxu1 %v4067_v1 }
 0x374   :  { %1205 = vmatpush1.msra.mxu0 %v3629_v6  ;;  %2516 = vmatpush3.msra.mxu1 %v4086_v11 }
 0x375   :  { %1206 = vmatprep.subr.mxu0 %v3633_v12  ;;  %2517 = vmatprep.subr.mxu1 %v4067_v1 }
 0x376   :  { %1207 = vmatpush1.msra.mxu0 %v3637_v9  ;;  %1240 = vmatprep.mubr.f32.mxu0 %v4067_v1 }
 0x377   :  { %2518 = vmatpush3.msra.mxu1 %v4089_v18  ;;  %2519 = vmatprep.mubr.msk.f32.mxu1 %vm2998_vm2, %v4067_v1 }
 0x378   :  { %1384 = vmatprep.subr.mxu0 %v3495_v20  ;;  %2522 = vmatprep.subr.mxu1 %v4067_v1 }
 0x417   :  { %v1034_v4 = vpop.f32.mrf.mxu0  ;;  %v1105_v11 = vpop.f32.mrf.mxu1 }
 0x418   :  { %v1035_v14 = vadd.f32 %v1034_v4, %v4091_v26 }
 0x419   :  { %v1036_v16 = vpop.f32.mrf.mxu0  ;;  %v2486_v22 = vpop.f32.mrf.mxu1 }
 0x41a   :  { %v1110_v28 = vrot.slane %v1035_v14, 5  ;;  %v1111_v24 = vrot.slane %v1035_v14, 6  ;;  %v1037_v30 = vadd.f32 %v1036_v16, %v3310_v39 }
 0x41c   :  { %v1114_v32 = vadd.f32 %v1110_v28, %v4092_v38  ;;  %v1115_v18 = vadd.f32 %v1111_v24, %v4093_v41  ;;  %v1129_v37 = vrot.slane %v1037_v30, 5  ;;  %v1130_v40 = vrot.slane %v1037_v30, 6 }
 0x41d   :  { %v1106_v28 = vadd.f32 %v1105_v11, %v4079_v15  ;;  %v1162_v11 = vrot.slane %v3510_v54, 7 }
 0x41e   :  { %v2147_v34 = vmul.f32 -1.442695, %v1114_v32  ;;  %v2148_v35 = vmul.f32 -1.442695, %v1115_v18  ;;  %v1133_v43 = vadd.f32 %v1129_v37, %v4078_v42  ;;  %v1134_v44 = vadd.f32 %v1130_v40, %v4094_v17 }
 0x41f   :  { %v1148_v32 = vrot.slane %v1106_v28, 5 }
 0x420   :  { %2733 = vpow2.f32 %v2147_v34  ;;  %v2149_v46 = vmul.f32 -1.442695, %v1133_v43  ;;  %v2150_v47 = vmul.f32 -1.442695, %v1134_v44  ;;  %v1149_v34 = vrot.slane %v1106_v28, 6 }
 0x421   :  { %2735 = vpow2.f32 %v2148_v35 }
 0x422   :  { %2737 = vpow2.f32 %v2149_v46 }
 0x423   :  { %2739 = vpow2.f32 %v2150_v47 }
 0x42d   :  { %v2734_v0 = vpop.eup %2733 }
 0x42e   :  { %v2736_v52 = vpop.eup %2735  ;;  %v1122_v4 = vadd.f32 1.0, %v2734_v0 }
 0x42f   :  { %v1123_v14 = vadd.f32 1.0, %v2736_v52  ;;  %v2738_v16 = vpop.eup %2737 }
 0x430   :  { %2741 = vrcp.f32 %v1122_v4  ;;  %v2740_v22 = vpop.eup %2739  ;;  %v1141_v24 = vadd.f32 1.0, %v2738_v16  ;;  %v1163_v4 = vrot.slane %v3512_v55, 7  ;;  %v3665_v55 = vld [vmem:[#allocation7 + $0x178] sm:$0xff] }
 0x431   :  { %2743 = vrcp.f32 %v1123_v14  ;;  %v1142_v30 = vadd.f32 1.0, %v2740_v22 }
 0x432   :  { %2745 = vrcp.f32 %v1141_v24 }
 0x433   :  { %2747 = vrcp.f32 %v1142_v30 }
 0x43d   :  { %v2742_v18 = vpop.eup %2741 }
 0x43e   :  { %v2744_v35 = vpop.eup %2743  ;;  %v1152_v37 = vmul.f32 %v2742_v18, %v1148_v32 }
 0x43f   :  { %v1153_v40 = vmul.f32 %v2744_v35, %v1149_v34  ;;  %v2746_v46 = vpop.eup %2745 }
 0x440   :  { %v1154_v43 = vadd.f32 %v1152_v37, %v3329_v45  ;;  %v2748_v47 = vpop.eup %2747  ;;  %v1158_v0 = vsub.f32 1.0, %v2746_v46  ;;  %v1166_v28 = vmul.f32 %v2746_v46, %v1162_v11  ;;  %v3671_v37 = vld [vmem:[#allocation7 + $0x160] sm:$0xff]  ;;  %v3707_v11 = vld [vmem:[#allocation7 + $0xd0] sm:$0xff] }
 0x441   :  { %v1155_v44 = vadd.f32 %v1153_v40, %v3331_v21  ;;  %v1159_v14 = vsub.f32 1.0, %v2748_v47  ;;  %v1167_v30 = vmul.f32 %v2748_v47, %v1163_v4  ;;  %v3677_v40 = vld [vmem:[#allocation7 + $0x148] sm:$0xff]  ;;  %v3695_v46 = vld [vmem:[#allocation7 + $0x100] sm:$0xff] }
 0x442   :  { %2749 = vtanh.f32 %v1154_v43  ;;  %v3683_v43 = vld [vmem:[#allocation7 + $0x130] sm:$0xff]  ;;  %v3701_v47 = vld [vmem:[#allocation7 + $0xe8] sm:$0xff] }
 0x443   :  { %2751 = vtanh.f32 %v1155_v44  ;;  %v3689_v44 = vld [vmem:[#allocation7 + $0x118] sm:$0xff]  ;;  %v3725_v4 = vld [vmem:[#allocation7 + $0x88] sm:$0xff] }
 0x44f   :  { %v2750_v52 = vpop.eup %2749 }
 0x450   :  { %v2752_v16 = vpop.eup %2751  ;;  %v1160_v22 = vmul.f32 %v2750_v52, %v1158_v0  ;;  %v3713_v0 = vld [vmem:[#allocation7 + $0xb8] sm:$0xff]  ;;  %v3719_v52 = vld [vmem:[#allocation7 + $0xa0] sm:$0xff] }
 0x451   :  { %v1161_v24 = vmul.f32 %v2752_v16, %v1159_v14  ;;  %v3731_v14 = vld [vmem:[#allocation7 + $0x70] sm:$0xff]  ;;  %v3737_v16 = vld [vmem:[#allocation7 + $0x58] sm:$0xff] }
 0x452   :  { %v3657_v32 = vadd.f32 %v1166_v28, %v1160_v22  ;;  %4101 = vst [vmem:[#allocation23_spill] sm:$0xff] %v3737_v16  ;;  %v3743_v22 = vld [vmem:[#allocation7 + $0x40] sm:$0xff]  ;;  %v3749_v28 = vld [vmem:[#allocation7 + $0x28] sm:$0xff] }
 0x453   :  { %v3659_v18 = vadd.f32 %v1167_v30, %v1161_v24  ;;  %4102 = vst [vmem:[#allocation20_spill] sm:$0xff] %v3743_v22  ;;  %4103 = vst [vmem:[#allocation21_spill] sm:$0xff] %v3749_v28  ;;  %v3756_v24 = vld [vmem:[#allocation7 + $0x10] sm:$0xff] }
 0x454   :  { %v1172_v34 = vrot.slane %v3657_v32, 3  ;;  %4104 = vst [vmem:[#allocation24_spill] sm:$0xff] %v3756_v24 }
 0x455   :  { %v1173_v35 = vrot.slane %v3659_v18, 2 }
 0x457   :  { %v1174_v54 = vsel %vm554_vm3, %v1173_v35, %v1172_v34 }
 0x458   :  { %1241 = vmatmul.mubr.f32.vlgmr.msra.gmra.mxu0 %v1174_v54  ;;  %2520 = vmatmul.mubr.f32.vlgmr.msra.gmra.mxu1 %v1174_v54 }
 0x459   :  { %1385 = vmatpush1.msra.mxu0 %v3517_v33  ;;  %2523 = vmatpush3.msra.mxu1 %v3665_v55 }
 0x45a   :  { %1386 = vmatprep.subr.mxu0 %v3521_v19  ;;  %2524 = vmatprep.subr.mxu1 %v4067_v1 }
 0x45b   :  { %1387 = vmatpush1.msra.mxu0 %v3525_v23  ;;  %2525 = vmatpush3.msra.mxu1 %v3671_v37 }
 0x45c   :  { %1388 = vmatprep.subr.mxu0 %v3529_v49  ;;  %2526 = vmatprep.subr.mxu1 %v4067_v1 }
 0x45d   :  { %1389 = vmatpush1.msra.mxu0 %v3533_v51  ;;  %2527 = vmatpush3.msra.mxu1 %v3677_v40 }
 0x45e   :  { %1390 = vmatprep.subr.mxu0 %v3537_v56  ;;  %2528 = vmatprep.subr.mxu1 %v4067_v1 }
 0x45f   :  { %1391 = vmatpush1.msra.mxu0 %v3541_v50  ;;  %2529 = vmatpush3.msra.mxu1 %v3683_v43 }
 0x460   :  { %1392 = vmatprep.subr.mxu0 %v3545_v57  ;;  %2530 = vmatprep.subr.mxu1 %v4067_v1 }
 0x461   :  { %1393 = vmatpush1.msra.mxu0 %v3549_v31  ;;  %2531 = vmatpush3.msra.mxu1 %v3689_v44 }
 0x462   :  { %1394 = vmatprep.subr.mxu0 %v3553_v58  ;;  %2532 = vmatprep.subr.mxu1 %v4067_v1 }
 0x463   :  { %1395 = vmatpush1.msra.mxu0 %v3557_v29  ;;  %2533 = vmatpush3.msra.mxu1 %v3695_v46 }
 0x464   :  { %1396 = vmatprep.subr.mxu0 %v3561_v59  ;;  %2534 = vmatprep.subr.mxu1 %v4067_v1 }
 0x465   :  { %1397 = vmatpush1.msra.mxu0 %v3565_v13  ;;  %2535 = vmatpush3.msra.mxu1 %v3701_v47 }
 0x466   :  { %1398 = vmatprep.subr.mxu0 %v3569_v60  ;;  %2536 = vmatprep.subr.mxu1 %v4067_v1 }
 0x467   :  { %1399 = vmatpush1.msra.mxu0 %v3573_v25  ;;  %2537 = vmatpush3.msra.mxu1 %v3707_v11 }
 0x468   :  { %1400 = vmatprep.subr.mxu0 %v3577_v61  ;;  %2538 = vmatprep.subr.mxu1 %v4067_v1 }
 0x469   :  { %1401 = vmatpush1.msra.mxu0 %v3581_v36  ;;  %2539 = vmatpush3.msra.mxu1 %v3713_v0 }
 0x46a   :  { %1402 = vmatprep.subr.mxu0 %v3585_v62  ;;  %2540 = vmatprep.subr.mxu1 %v4067_v1 }
 0x46b   :  { %1403 = vmatpush1.msra.mxu0 %v3589_v53  ;;  %2541 = vmatpush3.msra.mxu1 %v3719_v52 }
 0x46c   :  { %1404 = vmatprep.subr.mxu0 %v3593_v63  ;;  %2542 = vmatprep.subr.mxu1 %v4067_v1 }
 0x46d   :  { %1405 = vmatpush1.msra.mxu0 %v3597_v27  ;;  %2543 = vmatpush3.msra.mxu1 %v3725_v4 }
 0x46e   :  { %1406 = vmatprep.subr.mxu0 %v3601_v5  ;;  %2544 = vmatprep.subr.mxu1 %v4067_v1 }
 0x46f   :  { %1407 = vmatpush1.msra.mxu0 %v3605_v48  ;;  %2545 = vmatpush3.msra.mxu1 %v3731_v14 }
 0x470   :  { %1408 = vmatprep.subr.mxu0 %v3609_v7  ;;  %2546 = vmatprep.subr.mxu1 %v4067_v1 }
 0x471   :  { %1409 = vmatpush1.msra.mxu0 %v3613_v2  ;;  %2547 = vmatpush3.msra.mxu1 %v3737_v16 }
 0x472   :  { %1410 = vmatprep.subr.mxu0 %v3617_v8  ;;  %2548 = vmatprep.subr.mxu1 %v4067_v1 }
 0x473   :  { %1411 = vmatpush1.msra.mxu0 %v3621_v3  ;;  %2549 = vmatpush3.msra.mxu1 %v3743_v22 }
 0x474   :  { %1412 = vmatprep.subr.mxu0 %v3625_v10  ;;  %2550 = vmatprep.subr.mxu1 %v4067_v1 }
 0x475   :  { %1413 = vmatpush1.msra.mxu0 %v3629_v6  ;;  %2551 = vmatpush3.msra.mxu1 %v3749_v28 }
 0x476   :  { %1414 = vmatprep.subr.mxu0 %v3633_v12  ;;  %2552 = vmatprep.subr.mxu1 %v4067_v1 }
 0x477   :  { %1415 = vmatpush1.msra.mxu0 %v3637_v9  ;;  %1448 = vmatprep.mubr.f32.mxu0 %v4067_v1 }
 0x478   :  { %2553 = vmatpush3.msra.mxu1 %v3756_v24  ;;  %2554 = vmatprep.mubr.msk.f32.mxu1 %vm2998_vm2, %v4067_v1 }
 0x479   :  { %1592 = vmatprep.subr.mxu0 %v3495_v20  ;;  %2557 = vmatprep.subr.mxu1 %v4067_v1 }
 0x518   :  { %v1242_v30 = vpop.f32.mrf.mxu0  ;;  %v1313_v34 = vpop.f32.mrf.mxu1 }
 0x519   :  { %v1243_v35 = vadd.f32 %v1242_v30, %v4091_v26 }
 0x51a   :  { %v1244_v54 = vpop.f32.mrf.mxu0  ;;  %v2521_v12 = vpop.f32.mrf.mxu1 }
 0x51b   :  { %v1318_v9 = vrot.slane %v1243_v35, 4  ;;  %v1319_v28 = vrot.slane %v1243_v35, 5  ;;  %v1245_v6 = vadd.f32 %v1244_v54, %v3310_v39 }
 0x51d   :  { %v1322_v10 = vadd.f32 %v1318_v9, %v4092_v38  ;;  %v1323_v24 = vadd.f32 %v1319_v28, %v4093_v41  ;;  %v1337_v8 = vrot.slane %v1245_v6, 4  ;;  %v1338_v20 = vrot.slane %v1245_v6, 5 }
 0x51e   :  { %v1314_v6 = vadd.f32 %v1313_v34, %v4079_v15  ;;  %v1370_v34 = vrot.slane %v3657_v32, 7 }
 0x51f   :  { %v2151_v22 = vmul.f32 -1.442695, %v1322_v10  ;;  %v2152_v3 = vmul.f32 -1.442695, %v1323_v24  ;;  %v1341_v16 = vadd.f32 %v1337_v8, %v4078_v42  ;;  %v1342_v30 = vadd.f32 %v1338_v20, %v4094_v17 }
 0x520   :  { %v1356_v24 = vrot.slane %v1314_v6, 4  ;;  %v1357_v42 = vrot.slane %v1314_v6, 5 }
 0x521   :  { %2753 = vpow2.f32 %v2151_v22  ;;  %v2153_v26 = vmul.f32 -1.442695, %v1341_v16  ;;  %v2154_v12 = vmul.f32 -1.442695, %v1342_v30 }
 0x522   :  { %2755 = vpow2.f32 %v2152_v3 }
 0x523   :  { %2757 = vpow2.f32 %v2153_v26 }
 0x524   :  { %2759 = vpow2.f32 %v2154_v12 }
 0x52e   :  { %v2754_v35 = vpop.eup %2753 }
 0x52f   :  { %v2756_v54 = vpop.eup %2755  ;;  %v1330_v39 = vadd.f32 1.0, %v2754_v35 }
 0x530   :  { %v1331_v9 = vadd.f32 1.0, %v2756_v54  ;;  %v2758_v10 = vpop.eup %2757 }
 0x531   :  { %2761 = vrcp.f32 %v1330_v39  ;;  %v2760_v28 = vpop.eup %2759  ;;  %v1349_v22 = vadd.f32 1.0, %v2758_v10  ;;  %v1371_v10 = vrot.slane %v3659_v18, 7  ;;  %v4105_v18 = vld [vmem:[#allocation23_spill] sm:$0xff] }
 0x532   :  { %2763 = vrcp.f32 %v1331_v9  ;;  %v1350_v3 = vadd.f32 1.0, %v2760_v28 }
 0x533   :  { %2765 = vrcp.f32 %v1349_v22 }
 0x534   :  { %2767 = vrcp.f32 %v1350_v3 }
 0x53e   :  { %v2762_v8 = vpop.eup %2761 }
 0x53f   :  { %v2764_v20 = vpop.eup %2763  ;;  %v1360_v16 = vmul.f32 %v2762_v8, %v1356_v24 }
 0x540   :  { %v1361_v26 = vmul.f32 %v2764_v20, %v1357_v42  ;;  %v2766_v39 = vpop.eup %2765 }
 0x541   :  { %v1362_v30 = vadd.f32 %v1360_v16, %v3329_v45  ;;  %v2768_v35 = vpop.eup %2767  ;;  %v1366_v54 = vsub.f32 1.0, %v2766_v39  ;;  %v1374_v22 = vmul.f32 %v2766_v39, %v1370_v34  ;;  %v4108_v39 = vld [vmem:[#allocation20_spill] sm:$0xff]  ;;  %v4110_v34 = vld [vmem:[#allocation22_spill] sm:$0xff] }
 0x542   :  { %v1363_v12 = vadd.f32 %v1361_v26, %v3331_v21  ;;  %v1367_v28 = vsub.f32 1.0, %v2768_v35  ;;  %v1375_v3 = vmul.f32 %v2768_v35, %v1371_v10  ;;  %v4109_v35 = vld [vmem:[#allocation17_spill] sm:$0xff]  ;;  %v4113_v10 = vld [vmem:[#allocation19_spill] sm:$0xff] }
 0x543   :  { %2769 = vtanh.f32 %v1362_v30  ;;  %v4106_v30 = vld [vmem:[#allocation31_spill] sm:$0xff] }
 0x544   :  { %2771 = vtanh.f32 %v1363_v12  ;;  %v4107_v12 = vld [vmem:[#allocation16_spill] sm:$0xff] }
 0x550   :  { %v2770_v9 = vpop.eup %2769 }
 0x551   :  { %v2772_v6 = vpop.eup %2771  ;;  %v1368_v24 = vmul.f32 %v2770_v9, %v1366_v54  ;;  %v4111_v54 = vld [vmem:[#allocation21_spill] sm:$0xff]  ;;  %v4112_v9 = vld [vmem:[#allocation18_spill] sm:$0xff] }
 0x552   :  { %v1369_v42 = vmul.f32 %v2772_v6, %v1367_v28  ;;  %v4114_v28 = vld [vmem:[#allocation24_spill] sm:$0xff]  ;;  %v4115_v6 = vld [vmem:[#allocation15_spill] sm:$0xff] }
 0x553   :  { %v3774_v8 = vadd.f32 %v1374_v22, %v1368_v24 }
 0x554   :  { %v3776_v20 = vadd.f32 %v1375_v3, %v1369_v42  ;;  %v4116_v42 = vld [vmem:[#allocation25_spill] sm:$0xff] }
 0x555   :  { %v1380_v16 = vrot.slane %v3774_v8, 4 }
 0x556   :  { %v1381_v26 = vrot.slane %v3776_v20, 3 }
 0x558   :  { %v1382_v32 = vsel %vm554_vm3, %v1381_v26, %v1380_v16 }
 0x559   :  { %1449 = vmatmul.mubr.f32.vlgmr.msra.gmra.mxu0 %v1382_v32  ;;  %2555 = vmatmul.mubr.f32.vlgmr.msra.gmra.mxu1 %v1382_v32 }
 0x55a   :  { %1593 = vmatpush1.msra.mxu0 %v3517_v33  ;;  %2558 = vmatpush3.msra.mxu1 %v3665_v55 }
 0x55b   :  { %1594 = vmatprep.subr.mxu0 %v3521_v19  ;;  %2559 = vmatprep.subr.mxu1 %v4067_v1 }
 0x55c   :  { %1595 = vmatpush1.msra.mxu0 %v3525_v23  ;;  %2560 = vmatpush3.msra.mxu1 %v3671_v37 }
 0x55d   :  { %1596 = vmatprep.subr.mxu0 %v3529_v49  ;;  %2561 = vmatprep.subr.mxu1 %v4067_v1 }
 0x55e   :  { %1597 = vmatpush1.msra.mxu0 %v3533_v51  ;;  %2562 = vmatpush3.msra.mxu1 %v3677_v40 }
 0x55f   :  { %1598 = vmatprep.subr.mxu0 %v3537_v56  ;;  %2563 = vmatprep.subr.mxu1 %v4067_v1 }
 0x560   :  { %1599 = vmatpush1.msra.mxu0 %v3541_v50  ;;  %2564 = vmatpush3.msra.mxu1 %v3683_v43 }
 0x561   :  { %1600 = vmatprep.subr.mxu0 %v3545_v57  ;;  %2565 = vmatprep.subr.mxu1 %v4067_v1 }
 0x562   :  { %1601 = vmatpush1.msra.mxu0 %v3549_v31  ;;  %2566 = vmatpush3.msra.mxu1 %v3689_v44 }
 0x563   :  { %1602 = vmatprep.subr.mxu0 %v3553_v58  ;;  %2567 = vmatprep.subr.mxu1 %v4067_v1 }
 0x564   :  { %1603 = vmatpush1.msra.mxu0 %v3557_v29  ;;  %2568 = vmatpush3.msra.mxu1 %v3695_v46 }
 0x565   :  { %1604 = vmatprep.subr.mxu0 %v3561_v59  ;;  %2569 = vmatprep.subr.mxu1 %v4067_v1 }
 0x566   :  { %1605 = vmatpush1.msra.mxu0 %v3565_v13  ;;  %2570 = vmatpush3.msra.mxu1 %v3701_v47 }
 0x567   :  { %1606 = vmatprep.subr.mxu0 %v3569_v60  ;;  %2571 = vmatprep.subr.mxu1 %v4067_v1 }
 0x568   :  { %1607 = vmatpush1.msra.mxu0 %v3573_v25  ;;  %2572 = vmatpush3.msra.mxu1 %v3707_v11 }
 0x569   :  { %1608 = vmatprep.subr.mxu0 %v3577_v61  ;;  %2573 = vmatprep.subr.mxu1 %v4067_v1 }
 0x56a   :  { %1609 = vmatpush1.msra.mxu0 %v3581_v36  ;;  %2574 = vmatpush3.msra.mxu1 %v3713_v0 }
 0x56b   :  { %1610 = vmatprep.subr.mxu0 %v3585_v62  ;;  %2575 = vmatprep.subr.mxu1 %v4067_v1 }
 0x56c   :  { %1611 = vmatpush1.msra.mxu0 %v3589_v53  ;;  %2576 = vmatpush3.msra.mxu1 %v3719_v52 }
 0x56d   :  { %1612 = vmatprep.subr.mxu0 %v3593_v63  ;;  %2577 = vmatprep.subr.mxu1 %v4067_v1 }
 0x56e   :  { %1613 = vmatpush1.msra.mxu0 %v3597_v27  ;;  %2578 = vmatpush3.msra.mxu1 %v3725_v4 }
 0x56f   :  { %1614 = vmatprep.subr.mxu0 %v3601_v5  ;;  %2579 = vmatprep.subr.mxu1 %v4067_v1 }
 0x570   :  { %1615 = vmatpush1.msra.mxu0 %v3605_v48  ;;  %2580 = vmatpush3.msra.mxu1 %v3731_v14 }
 0x571   :  { %1616 = vmatprep.subr.mxu0 %v3609_v7  ;;  %2581 = vmatprep.subr.mxu1 %v4067_v1 }
 0x572   :  { %1617 = vmatpush1.msra.mxu0 %v3613_v2  ;;  %2582 = vmatpush3.msra.mxu1 %v4105_v18 }
 0x573   :  { %1618 = vmatprep.subr.mxu0 %v4106_v30  ;;  %2583 = vmatprep.subr.mxu1 %v4067_v1  ;;  %v4118_v30 = vld [vmem:[#allocation29_spill] sm:$0xff] }
 0x574   :  { %1619 = vmatpush1.msra.mxu0 %v4107_v12  ;;  %2584 = vmatpush3.msra.mxu1 %v4108_v39 }
 0x575   :  { %1620 = vmatprep.subr.mxu0 %v4109_v35  ;;  %2585 = vmatprep.subr.mxu1 %v4067_v1 }
 0x576   :  { %1621 = vmatpush1.msra.mxu0 %v4110_v34  ;;  %2586 = vmatpush3.msra.mxu1 %v4111_v54 }
 0x577   :  { %1622 = vmatprep.subr.mxu0 %v4112_v9  ;;  %2587 = vmatprep.subr.mxu1 %v4067_v1 }
 0x578   :  { %1623 = vmatpush1.msra.mxu0 %v4113_v10  ;;  %1656 = vmatprep.mubr.f32.mxu0 %v4067_v1  ;;  %v4117_v10 = vld [vmem:[#allocation26_spill] sm:$0xff] }
 0x579   :  { %2588 = vmatpush3.msra.mxu1 %v4114_v28  ;;  %2589 = vmatprep.mubr.msk.f32.mxu1 %vm2998_vm2, %v4067_v1 }
 0x57a   :  { %1800 = vmatprep.subr.mxu0 %v4115_v6  ;;  %2592 = vmatprep.subr.mxu1 %v4067_v1 }
 0x619   :  { %v1450_v24 = vpop.f32.mrf.mxu0  ;;  %v1521_v22 = vpop.f32.mrf.mxu1 }
 0x61a   :  { %v1451_v3 = vadd.f32 %v1450_v24, %v4116_v42 }
 0x61b   :  { %v1452_v16 = vpop.f32.mrf.mxu0  ;;  %v2556_v26 = vpop.f32.mrf.mxu1 }
 0x61c   :  { %v1526_v32 = vrot.slane %v1451_v3, 3  ;;  %v1527_v9 = vrot.slane %v1451_v3, 4  ;;  %v1453_v54 = vadd.f32 %v1452_v16, %v4117_v10 }
 0x61e   :  { %v1530_v34 = vadd.f32 %v1526_v32, %v4092_v38  ;;  %v1531_v28 = vadd.f32 %v1527_v9, %v4093_v41  ;;  %v1545_v12 = vrot.slane %v1453_v54, 3  ;;  %v1546_v6 = vrot.slane %v1453_v54, 4 }
 0x61f   :  { %v1522_v54 = vadd.f32 %v1521_v22, %v4079_v15  ;;  %v1578_v22 = vrot.slane %v3774_v8, 7 }
 0x620   :  { %v2155_v35 = vmul.f32 -1.442695, %v1530_v34  ;;  %v2156_v39 = vmul.f32 -1.442695, %v1531_v28  ;;  %v1549_v18 = vadd.f32 %v1545_v12, %v4118_v30  ;;  %v1550_v24 = vadd.f32 %v1546_v6, %v4094_v17 }
 0x621   :  { %v1564_v28 = vrot.slane %v1522_v54, 3  ;;  %v1565_v30 = vrot.slane %v1522_v54, 4 }
 0x622   :  { %2773 = vpow2.f32 %v2155_v35  ;;  %v2157_v42 = vmul.f32 -1.442695, %v1549_v18  ;;  %v2158_v26 = vmul.f32 -1.442695, %v1550_v24 }
 0x623   :  { %2775 = vpow2.f32 %v2156_v39 }
 0x624   :  { %2777 = vpow2.f32 %v2157_v42 }
 0x625   :  { %2779 = vpow2.f32 %v2158_v26 }
 0x62f   :  { %v2774_v3 = vpop.eup %2773 }
 0x630   :  { %v2776_v16 = vpop.eup %2775  ;;  %v1538_v10 = vadd.f32 1.0, %v2774_v3 }
 0x631   :  { %v1539_v32 = vadd.f32 1.0, %v2776_v16  ;;  %v2778_v34 = vpop.eup %2777 }
 0x632   :  { %2781 = vrcp.f32 %v1538_v10  ;;  %v2780_v9 = vpop.eup %2779  ;;  %v1557_v35 = vadd.f32 1.0, %v2778_v34  ;;  %v1579_v34 = vrot.slane %v3776_v20, 7 }
 0x633   :  { %2783 = vrcp.f32 %v1539_v32  ;;  %v1558_v39 = vadd.f32 1.0, %v2780_v9 }
 0x634   :  { %2785 = vrcp.f32 %v1557_v35 }
 0x635   :  { %2787 = vrcp.f32 %v1558_v39 }
 0x63f   :  { %v2782_v12 = vpop.eup %2781 }
 0x640   :  { %v2784_v6 = vpop.eup %2783  ;;  %v1568_v18 = vmul.f32 %v2782_v12, %v1564_v28 }
 0x641   :  { %v1569_v42 = vmul.f32 %v2784_v6, %v1565_v30  ;;  %v2786_v10 = vpop.eup %2785 }
 0x642   :  { %v1570_v24 = vadd.f32 %v1568_v18, %v3329_v45  ;;  %v2788_v3 = vpop.eup %2787  ;;  %v1574_v16 = vsub.f32 1.0, %v2786_v10  ;;  %v1582_v35 = vmul.f32 %v2786_v10, %v1578_v22 }
 0x643   :  { %v1571_v26 = vadd.f32 %v1569_v42, %v3331_v21  ;;  %v1575_v9 = vsub.f32 1.0, %v2788_v3  ;;  %v1583_v39 = vmul.f32 %v2788_v3, %v1579_v34 }
 0x644   :  { %2789 = vtanh.f32 %v1570_v24 }
 0x645   :  { %2791 = vtanh.f32 %v1571_v26 }
 0x651   :  { %v2790_v32 = vpop.eup %2789 }
 0x652   :  { %v2792_v54 = vpop.eup %2791  ;;  %v1576_v28 = vmul.f32 %v2790_v32, %v1574_v16 }
 0x653   :  { %v1577_v30 = vmul.f32 %v2792_v54, %v1575_v9 }
 0x654   :  { %v3859_v12 = vadd.f32 %v1582_v35, %v1576_v28 }
 0x655   :  { %v3861_v6 = vadd.f32 %v1583_v39, %v1577_v30 }
 0x656   :  { %v1588_v18 = vrot.slane %v3859_v12, 5  ;;  %v1786_v30 = vrot.slane %v3859_v12, 7 }
 0x657   :  { %v1589_v42 = vrot.slane %v3861_v6, 4 }
 0x659   :  { %v1590_v8 = vsel %vm554_vm3, %v1589_v42, %v1588_v18  ;;  %v1787_v42 = vrot.slane %v3861_v6, 7  ;;  %v2023_v6 = vld [vmem:[#allocation8 + $0x78] sm:$0xff] }
 0x65a   :  { %1657 = vmatmul.mubr.f32.vlgmr.msra.gmra.mxu0 %v1590_v8  ;;  %2590 = vmatmul.mubr.f32.vlgmr.msra.gmra.mxu1 %v1590_v8 }
 0x65b   :  { %1801 = vmatpush1.msra.mxu0 %v3517_v33  ;;  %2593 = vmatpush3.msra.mxu1 %v3665_v55  ;;  %v4119_v33 = vld [vmem:[#allocation23_spill] sm:$0xff] }
 0x65c   :  { %1802 = vmatprep.subr.mxu0 %v3521_v19  ;;  %2594 = vmatprep.subr.mxu1 %v4067_v1  ;;  %v4120_v19 = vld [vmem:[#allocation31_spill] sm:$0xff] }
 0x65d   :  { %1803 = vmatpush1.msra.mxu0 %v3525_v23  ;;  %2595 = vmatpush3.msra.mxu1 %v3671_v37  ;;  %v4121_v23 = vld [vmem:[#allocation16_spill] sm:$0xff]  ;;  %v4131_v37 = vld [vmem:[#allocation29_spill] sm:$0xff] }
 0x65e   :  { %1804 = vmatprep.subr.mxu0 %v3529_v49  ;;  %2596 = vmatprep.subr.mxu1 %v4067_v1  ;;  %v4122_v49 = vld [vmem:[#allocation20_spill] sm:$0xff] }
 0x65f   :  { %1805 = vmatpush1.msra.mxu0 %v3533_v51  ;;  %2597 = vmatpush3.msra.mxu1 %v3677_v40  ;;  %v4123_v51 = vld [vmem:[#allocation17_spill] sm:$0xff] }
 0x660   :  { %1806 = vmatprep.subr.mxu0 %v3537_v56  ;;  %2598 = vmatprep.subr.mxu1 %v4067_v1  ;;  %v4124_v56 = vld [vmem:[#allocation22_spill] sm:$0xff] }
 0x661   :  { %1807 = vmatpush1.msra.mxu0 %v3541_v50  ;;  %2599 = vmatpush3.msra.mxu1 %v3683_v43  ;;  %v4125_v50 = vld [vmem:[#allocation21_spill] sm:$0xff] }
 0x662   :  { %1808 = vmatprep.subr.mxu0 %v3545_v57  ;;  %2600 = vmatprep.subr.mxu1 %v4067_v1  ;;  %v4126_v57 = vld [vmem:[#allocation18_spill] sm:$0xff] }
 0x663   :  { %1809 = vmatpush1.msra.mxu0 %v3549_v31  ;;  %2601 = vmatpush3.msra.mxu1 %v3689_v44  ;;  %v4127_v31 = vld [vmem:[#allocation19_spill] sm:$0xff] }
 0x664   :  { %1810 = vmatprep.subr.mxu0 %v3553_v58  ;;  %2602 = vmatprep.subr.mxu1 %v4067_v1  ;;  %v4128_v58 = vld [vmem:[#allocation24_spill] sm:$0xff] }
 0x665   :  { %1811 = vmatpush1.msra.mxu0 %v3557_v29  ;;  %2603 = vmatpush3.msra.mxu1 %v3695_v46 }
 0x666   :  { %1812 = vmatprep.subr.mxu0 %v3561_v59  ;;  %2604 = vmatprep.subr.mxu1 %v4067_v1 }
 0x667   :  { %1813 = vmatpush1.msra.mxu0 %v3565_v13  ;;  %2605 = vmatpush3.msra.mxu1 %v3701_v47  ;;  %v4129_v13 = vld [vmem:[#allocation25_spill] sm:$0xff] }
 0x668   :  { %1814 = vmatprep.subr.mxu0 %v3569_v60  ;;  %2606 = vmatprep.subr.mxu1 %v4067_v1 }
 0x669   :  { %1815 = vmatpush1.msra.mxu0 %v3573_v25  ;;  %2607 = vmatpush3.msra.mxu1 %v3707_v11 }
 0x66a   :  { %1816 = vmatprep.subr.mxu0 %v3577_v61  ;;  %2608 = vmatprep.subr.mxu1 %v4067_v1 }
 0x66b   :  { %1817 = vmatpush1.msra.mxu0 %v3581_v36  ;;  %2609 = vmatpush3.msra.mxu1 %v3713_v0 }
 0x66c   :  { %1818 = vmatprep.subr.mxu0 %v3585_v62  ;;  %2610 = vmatprep.subr.mxu1 %v4067_v1 }
 0x66d   :  { %1819 = vmatpush1.msra.mxu0 %v3589_v53  ;;  %2611 = vmatpush3.msra.mxu1 %v3719_v52  ;;  %v4130_v53 = vld [vmem:[#allocation26_spill] sm:$0xff] }
 0x66e   :  { %1820 = vmatprep.subr.mxu0 %v3593_v63  ;;  %2612 = vmatprep.subr.mxu1 %v4067_v1 }
 0x66f   :  { %1821 = vmatpush1.msra.mxu0 %v3597_v27  ;;  %2613 = vmatpush3.msra.mxu1 %v3725_v4 }
 0x670   :  { %1822 = vmatprep.subr.mxu0 %v3601_v5  ;;  %2614 = vmatprep.subr.mxu1 %v4067_v1 }
 0x671   :  { %1823 = vmatpush1.msra.mxu0 %v3605_v48  ;;  %2615 = vmatpush3.msra.mxu1 %v3731_v14 }
 0x672   :  { %1824 = vmatprep.subr.mxu0 %v3609_v7  ;;  %2616 = vmatprep.subr.mxu1 %v4067_v1 }
 0x673   :  { %1825 = vmatpush1.msra.mxu0 %v3613_v2  ;;  %2617 = vmatpush3.msra.mxu1 %v4119_v33 }
 0x674   :  { %1826 = vmatprep.subr.mxu0 %v4120_v19  ;;  %2618 = vmatprep.subr.mxu1 %v4067_v1 }
 0x675   :  { %1827 = vmatpush1.msra.mxu0 %v4121_v23  ;;  %2619 = vmatpush3.msra.mxu1 %v4122_v49 }
 0x676   :  { %1828 = vmatprep.subr.mxu0 %v4123_v51  ;;  %2620 = vmatprep.subr.mxu1 %v4067_v1 }
 0x677   :  { %1829 = vmatpush1.msra.mxu0 %v4124_v56  ;;  %2621 = vmatpush3.msra.mxu1 %v4125_v50 }
 0x678   :  { %1830 = vmatprep.subr.mxu0 %v4126_v57  ;;  %2622 = vmatprep.subr.mxu1 %v4067_v1 }
 0x679   :  { %1831 = vmatpush1.msra.mxu0 %v4127_v31  ;;  %1864 = vmatprep.mubr.f32.mxu0 %v4067_v1 }
 0x67a   :  { %2623 = vmatpush3.msra.mxu1 %v4128_v58  ;;  %2624 = vmatprep.mubr.msk.f32.mxu1 %vm2998_vm2, %v4067_v1  ;;  %v2022_v58 = vld [vmem:[#allocation8 + $0x70] sm:$0xff] }
 0x67b   :  { %2627 = vmatprep.subr.mxu0 %v4067_v1 }
 0x71a   :  { %v1658_v29 = vpop.f32.mrf.mxu0  ;;  %v1729_v59 = vpop.f32.mrf.mxu1 }
 0x71b   :  { %v1659_v60 = vadd.f32 %v1658_v29, %v4129_v13  ;;  %v1730_v20 = vadd.f32 %v1729_v59, %v4079_v15  ;;  %v2021_v29 = vld [vmem:[#allocation8 + $0x68] sm:$0xff]  ;;  %v2020_v59 = vld [vmem:[#allocation8 + $0x60] sm:$0xff] }
 0x71c   :  { %v1660_v25 = vpop.f32.mrf.mxu0  ;;  %v2591_v61 = vpop.f32.mrf.mxu1 }
 0x71d   :  { %v1734_v36 = vrot.slane %v1659_v60, 2  ;;  %v1735_v62 = vrot.slane %v1659_v60, 3  ;;  %v1661_v63 = vadd.f32 %v1660_v25, %v4130_v53  ;;  %v1772_v10 = vrot.slane %v1730_v20, 2  ;;  %v2019_v60 = vld [vmem:[#allocation8 + $0x58] sm:$0xff]  ;;  %v2018_v25 = vld [vmem:[#allocation8 + $0x50] sm:$0xff]  ;;  %v2017_v61 = vld [vmem:[#allocation8 + $0x48] sm:$0xff] }
 0x71e   :  { %v1773_v22 = vrot.slane %v1730_v20, 3 }
 0x71f   :  { %v1738_v27 = vadd.f32 %v1734_v36, %v4092_v38  ;;  %v1739_v5 = vadd.f32 %v1735_v62, %v4093_v41  ;;  %v1753_v2 = vrot.slane %v1661_v63, 2  ;;  %v1754_v55 = vrot.slane %v1661_v63, 3  ;;  %v2016_v36 = vld [vmem:[#allocation8 + $0x40] sm:$0xff]  ;;  %v2015_v62 = vld [vmem:[#allocation8 + $0x38] sm:$0xff]  ;;  %v2014_v63 = vld [vmem:[#allocation8 + $0x30] sm:$0xff] }
 0x721   :  { %v2159_v48 = vmul.f32 -1.442695, %v1738_v27  ;;  %v2160_v7 = vmul.f32 -1.442695, %v1739_v5  ;;  %v1757_v40 = vadd.f32 %v1753_v2, %v4131_v37  ;;  %v1758_v43 = vadd.f32 %v1754_v55, %v4094_v17  ;;  %v2013_v27 = vld [vmem:[#allocation8 + $0x28] sm:$0xff]  ;;  %v2012_v5 = vld [vmem:[#allocation8 + $0x20] sm:$0xff] }
 0x722   :  { %v2009_v2 = vld [vmem:[#allocation8 + $0x8] sm:$0xff]  ;;  %v2008_v55 = vld [vmem:[#allocation8] sm:$0xff] }
 0x723   :  { %2793 = vpow2.f32 %v2159_v48  ;;  %v2161_v44 = vmul.f32 -1.442695, %v1757_v40  ;;  %v2162_v46 = vmul.f32 -1.442695, %v1758_v43  ;;  %v2011_v48 = vld [vmem:[#allocation8 + $0x18] sm:$0xff] }
 0x724   :  { %2795 = vpow2.f32 %v2160_v7  ;;  %v2010_v7 = vld [vmem:[#allocation8 + $0x10] sm:$0xff] }
 0x725   :  { %2797 = vpow2.f32 %v2161_v44 }
 0x726   :  { %2799 = vpow2.f32 %v2162_v46 }
 0x730   :  { %v2794_v47 = vpop.eup %2793 }
 0x731   :  { %v2796_v11 = vpop.eup %2795  ;;  %v1746_v0 = vadd.f32 1.0, %v2794_v47 }
 0x732   :  { %v1747_v52 = vadd.f32 1.0, %v2796_v11  ;;  %v2798_v4 = vpop.eup %2797 }
 0x733   :  { %2801 = vrcp.f32 %v1746_v0  ;;  %v2800_v14 = vpop.eup %2799  ;;  %v1765_v24 = vadd.f32 1.0, %v2798_v4 }
 0x734   :  { %2803 = vrcp.f32 %v1747_v52  ;;  %v1766_v26 = vadd.f32 1.0, %v2800_v14 }
 0x735   :  { %2805 = vrcp.f32 %v1765_v24 }
 0x736   :  { %2807 = vrcp.f32 %v1766_v26 }
 0x740   :  { %v2802_v3 = vpop.eup %2801 }
 0x741   :  { %v2804_v16 = vpop.eup %2803  ;;  %v1776_v32 = vmul.f32 %v2802_v3, %v1772_v10 }
 0x742   :  { %v1777_v34 = vmul.f32 %v2804_v16, %v1773_v22  ;;  %v2806_v28 = vpop.eup %2805 }
 0x743   :  { %v1778_v9 = vadd.f32 %v1776_v32, %v3329_v45  ;;  %v2808_v35 = vpop.eup %2807  ;;  %v1782_v39 = vsub.f32 1.0, %v2806_v28  ;;  %v1790_v23 = vmul.f32 %v2806_v28, %v1786_v30 }
 0x744   :  { %v1779_v54 = vadd.f32 %v1777_v34, %v3331_v21  ;;  %v1783_v8 = vsub.f32 1.0, %v2808_v35  ;;  %v1791_v51 = vmul.f32 %v2808_v35, %v1787_v42 }
 0x745   :  { %2809 = vtanh.f32 %v1778_v9 }
 0x746   :  { %2811 = vtanh.f32 %v1779_v54 }
 0x752   :  { %v2810_v18 = vpop.eup %2809 }
 0x753   :  { %v2812_v33 = vpop.eup %2811  ;;  %v1784_v19 = vmul.f32 %v2810_v18, %v1782_v39 }
 0x754   :  { %v1785_v49 = vmul.f32 %v2812_v33, %v1783_v8 }
 0x755   :  { %v3943_v56 = vadd.f32 %v1790_v23, %v1784_v19 }
 0x756   :  { %v3945_v50 = vadd.f32 %v1791_v51, %v1785_v49 }
 0x757   :  { %v1796_v57 = vrot.slane %v3943_v56, 6 }
 0x758   :  { %v1797_v31 = vrot.slane %v3945_v50, 5  ;;  %v1995_v51 = vrot.slane %v3945_v50, 7  ;;  %v2167_v50 = vld [vmem:[%s3991_s6] ss:$0 sm:$0xff] }
 0x75a   :  { %v1798_v12 = vsel %vm554_vm3, %v1797_v31, %v1796_v57 }
 0x75b   :  { %1865 = vmatmul.mubr.f32.vlgmr.msra.gmra.mxu0 %v1798_v12  ;;  %2625 = vmatmul.mubr.f32.vlgmr.msra.gmra.mxu1 %v1798_v12 }
 0x75c   :  { %2659 = vmatprep.mubr.msk.f32.mxu0 %vm2998_vm2, %v4067_v1  ;;  %2628 = vmatpush3.msra.mxu0 %v2023_v6 }
 0x75d   :  { %2629 = vmatprep.subr.mxu0 %v4067_v1 }
 0x75e   :  { %2630 = vmatpush3.msra.mxu0 %v2022_v58 }
 0x75f   :  { %2631 = vmatprep.subr.mxu0 %v4067_v1 }
 0x760   :  { %2632 = vmatpush3.msra.mxu0 %v2021_v29 }
 0x761   :  { %2633 = vmatprep.subr.mxu0 %v4067_v1 }
 0x762   :  { %2634 = vmatpush3.msra.mxu0 %v2020_v59 }
 0x763   :  { %2635 = vmatprep.subr.mxu0 %v4067_v1 }
 0x764   :  { %2636 = vmatpush3.msra.mxu0 %v2019_v60 }
 0x765   :  { %2637 = vmatprep.subr.mxu0 %v4067_v1 }
 0x766   :  { %2638 = vmatpush3.msra.mxu0 %v2018_v25 }
 0x767   :  { %2639 = vmatprep.subr.mxu0 %v4067_v1 }
 0x768   :  { %2640 = vmatpush3.msra.mxu0 %v2017_v61 }
 0x769   :  { %2641 = vmatprep.subr.mxu0 %v4067_v1 }
 0x76a   :  { %2642 = vmatpush3.msra.mxu0 %v2016_v36 }
 0x76b   :  { %2643 = vmatprep.subr.mxu0 %v4067_v1 }
 0x76c   :  { %2644 = vmatpush3.msra.mxu0 %v2015_v62 }
 0x76d   :  { %2645 = vmatprep.subr.mxu0 %v4067_v1 }
 0x76e   :  { %2646 = vmatpush3.msra.mxu0 %v2014_v63 }
 0x76f   :  { %2647 = vmatprep.subr.mxu0 %v4067_v1 }
 0x770   :  { %2648 = vmatpush3.msra.mxu0 %v2013_v27 }
 0x771   :  { %2649 = vmatprep.subr.mxu0 %v4067_v1 }
 0x772   :  { %2650 = vmatpush3.msra.mxu0 %v2012_v5 }
 0x773   :  { %2651 = vmatprep.subr.mxu0 %v4067_v1 }
 0x774   :  { %2652 = vmatpush3.msra.mxu0 %v2011_v48 }
 0x775   :  { %2653 = vmatprep.subr.mxu0 %v4067_v1 }
 0x776   :  { %2654 = vmatpush3.msra.mxu0 %v2010_v7 }
 0x777   :  { %2655 = vmatprep.subr.mxu0 %v4067_v1 }
 0x778   :  { %2656 = vmatpush3.msra.mxu0 %v2009_v2 }
 0x779   :  { %2657 = vmatprep.subr.mxu0 %v4067_v1 }
 0x77a   :  { %2658 = vmatpush3.msra.mxu0 %v2008_v55 }
 0x81b   :  { %v1866_v40 = vpop.f32.mrf.mxu0  ;;  %v1937_v43 = vpop.f32.mrf.mxu1 }
 0x81c   :  { %v1867_v44 = vadd.f32 %v1866_v40, %v4129_v13  ;;  %v1938_v9 = vadd.f32 %v1937_v43, %v4079_v15  ;;  %v1994_v15 = vrot.slane %v3943_v56, 7 }
 0x81d   :  { %v1868_v46 = vpop.f32.mrf.mxu0  ;;  %v2626_v47 = vpop.f32.mrf.mxu1 }
 0x81e   :  { %v1942_v11 = vrot.slane %v1867_v44, 1  ;;  %v1943_v0 = vrot.slane %v1867_v44, 2  ;;  %v1869_v52 = vadd.f32 %v1868_v46, %v4130_v53  ;;  %v1980_v35 = vrot.slane %v1938_v9, 1 }
 0x81f   :  { %v1981_v30 = vrot.slane %v1938_v9, 2 }
 0x820   :  { %v1946_v4 = vadd.f32 %v1942_v11, %v4092_v38  ;;  %v1947_v14 = vadd.f32 %v1943_v0, %v4093_v41  ;;  %v1961_v26 = vrot.slane %v1869_v52, 1  ;;  %v1962_v10 = vrot.slane %v1869_v52, 2 }
 0x822   :  { %v2163_v20 = vmul.f32 -1.442695, %v1946_v4  ;;  %v2164_v24 = vmul.f32 -1.442695, %v1947_v14  ;;  %v1965_v1 = vadd.f32 %v1961_v26, %v4131_v37  ;;  %v1966_v13 = vadd.f32 %v1962_v10, %v4094_v17 }
 0x824   :  { %2813 = vpow2.f32 %v2163_v20  ;;  %v2165_v3 = vmul.f32 -1.442695, %v1965_v1  ;;  %v2166_v22 = vmul.f32 -1.442695, %v1966_v13 }
 0x825   :  { %2815 = vpow2.f32 %v2164_v24 }
 0x826   :  { %2817 = vpow2.f32 %v2165_v3 }
 0x827   :  { %2819 = vpow2.f32 %v2166_v22 }
 0x831   :  { %v2814_v16 = vpop.eup %2813 }
 0x832   :  { %v2816_v53 = vpop.eup %2815  ;;  %v1954_v32 = vadd.f32 1.0, %v2814_v16 }
 0x833   :  { %v1955_v38 = vadd.f32 1.0, %v2816_v53  ;;  %v2818_v41 = vpop.eup %2817 }
 0x834   :  { %2821 = vrcp.f32 %v1954_v32  ;;  %v2820_v34 = vpop.eup %2819  ;;  %v1973_v54 = vadd.f32 1.0, %v2818_v41 }
 0x835   :  { %2823 = vrcp.f32 %v1955_v38  ;;  %v1974_v28 = vadd.f32 1.0, %v2820_v34 }
 0x836   :  { %2825 = vrcp.f32 %v1973_v54 }
 0x837   :  { %2827 = vrcp.f32 %v1974_v28 }
 0x841   :  { %v2822_v37 = vpop.eup %2821 }
 0x842   :  { %v2824_v17 = vpop.eup %2823  ;;  %v1984_v39 = vmul.f32 %v2822_v37, %v1980_v35 }
 0x843   :  { %v1985_v18 = vmul.f32 %v2824_v17, %v1981_v30  ;;  %v2826_v33 = vpop.eup %2825 }
 0x844   :  { %v1986_v42 = vadd.f32 %v1984_v39, %v3329_v45  ;;  %v2828_v19 = vpop.eup %2827  ;;  %v1990_v23 = vsub.f32 1.0, %v2826_v33  ;;  %v1998_v6 = vmul.f32 %v2826_v33, %v1994_v15 }
 0x845   :  { %v1987_v8 = vadd.f32 %v1985_v18, %v3331_v21  ;;  %v1991_v57 = vsub.f32 1.0, %v2828_v19  ;;  %v1999_v29 = vmul.f32 %v2828_v19, %v1995_v51 }
 0x846   :  { %2829 = vtanh.f32 %v1986_v42 }
 0x847   :  { %2831 = vtanh.f32 %v1987_v8 }
 0x853   :  { %v2830_v49 = vpop.eup %2829 }
 0x854   :  { %v2832_v31 = vpop.eup %2831  ;;  %v1992_v12 = vmul.f32 %v2830_v49, %v1990_v23 }
 0x855   :  { %v1993_v58 = vmul.f32 %v2832_v31, %v1991_v57 }
 0x856   :  { %v2000_v59 = vadd.f32 %v1998_v6, %v1992_v12 }
 0x857   :  { %v2001_v45 = vadd.f32 %v1999_v29, %v1993_v58 }
 0x858   :  { %vm2002_vm4 = vcmp.ge.f32.partialorder %v2000_v59, 0.0  ;;  %v2004_v21 = vmul.f32 0.01, %v2000_v59 }
 0x859   :  { %vm2003_vm5 = vcmp.ge.f32.partialorder %v2001_v45, 0.0  ;;  %v2005_v60 = vmul.f32 0.01, %v2001_v45 }
 0x85a   :  { %v2006_v25 = vsel %vm2002_vm4, %v2000_v59, %v2004_v21 }
 0x85b   :  { %v2007_v61 = vsel %vm2003_vm5, %v2001_v45, %v2005_v60  ;;  %v2033_v36 = vrot.slane %v2006_v25, 7 }
 0x85c   :  { %v2034_v56 = vrot.slane %v2007_v61, 6 }
 0x85e   :  { %v2035_v62 = vsel %vm554_vm3, %v2034_v56, %v2033_v36 }
 0x85f   :  { %2660 = vmatmul.mubr.f32.vlgmr.msra.gmra.mxu0 %v2035_v62 }
 0x91f   :  { %v2103_v63 = vpop.f32.mrf.mxu0 }
 0x920   :  { %v2104_v27 = vadd.f32 %v2167_v50, %v2103_v63 }
 0x921   :  { %v2661_v5 = vpop.f32.mrf.mxu0 }
 0x922   :  { %v2108_v48 = vmul.f32 0.01, %v2104_v27  ;;  %vm2107_vm6 = vcmp.ge.f32.partialorder %v2104_v27, 0.0 }
 0x924   :  { %v2109_v7 = vsel %vm2107_vm6, %v2104_v27, %v2108_v48 }
 0x925   :  { %2110 = vst [vmem:[#allocation10] sm:$0x3] %v2109_v7 }
 0x926   :  { %2972 = shalt.err (!%p2969_p10)
}
 0x927   :  { %2120 = dma.vmem_to_hbm [thread:$0]  %s2118_s26, 32, %s3992_s7, [#allocation4]  }
 0x928   :  { %2987 = dma.done.wait [#allocation4], 32  }
 0x929   :  { %2988 = vsyncadd [#allocation4], 4294967264 }
 0x92a   :  { %2124 = vsyncpa [#allocation3], 1 }
 0x92b   :  { %2125 = vsyncpa [#allocation6], 1 }
 0x92c   :  { %2126 = vsyncpa [#allocation9], 1 }
 0x92d   :  { %2127 = vsyncpa [#allocation4], 1 }

</bundles_post_ra>
